<compile_context>
chip_gen: v7x
topology: tpu7x:2x2x1
jax: 0.10.0
libtpu: 0.0.40
codegen_flags: <defaults>
</compile_context>

<pallas_src>
import jax
import jax.numpy as jnp
import numpy as np
from jax.experimental import pallas as pl
from jax.experimental.pallas import tpu as pltpu

EPS = 1e-5
LANE = 128
VMEM = pl.BlockSpec(memory_space=pltpu.MemorySpace.VMEM)


# ---------------------------------------------------------------- kernels ---

def _linear_stats_kernel(z_ref, w_ref, b_ref, g_ref, out_ref, stats_ref):
    # z: (B, nz) f32, w: (nz, Mp) bf16 (NHWC-ordered columns), b: (1, Mp) f32,
    # g: (Mp, C) 0/1 channel-grouping matrix.
    acc = jnp.dot(z_ref[...].astype(jnp.bfloat16), w_ref[...],
                  preferred_element_type=jnp.float32) + b_ref[...]
    # Per-channel batch stats for the following BatchNorm2d, without any
    # lane-splitting reshape: column sums, then group columns by channel.
    colsum = jnp.sum(acc, axis=0, keepdims=True)                 # (1, Mp)
    colsq = jnp.sum(acc * acc, axis=0, keepdims=True)            # (1, Mp)
    s1 = jnp.dot(colsum, g_ref[...], preferred_element_type=jnp.float32)
    s2 = jnp.dot(colsq, g_ref[...], preferred_element_type=jnp.float32)
    stats_ref[...] = jnp.concatenate([s1, s2], axis=0)[None]     # (1, 2, C)
    out_ref[...] = acc.astype(jnp.bfloat16)


def _make_conv_kernel(*, upsample, apply_lrelu, inv_n_prev, final):
    """Fused [BN(+LReLU) of previous stage] -> [2x nearest upsample] ->
    [3x3 conv as one im2col matmul] -> [stats | bias+sigmoid] kernel."""

    def kernel(stats_ref, g_ref, b_ref, s_ref, x_ref, w_ref, *rest):
        if final:
            bias_ref, out_ref = rest
        else:
            out_ref, ostats_ref = rest

        # ---- previous stage's BatchNorm (exact full-batch stats) on load ----
        tot = jnp.sum(stats_ref[...], axis=0)                 # (2, Cin)
        mean = tot[0:1] * inv_n_prev                          # (1, Cin)
        var = tot[1:2] * inv_n_prev - mean * mean
        scale = g_ref[...] * jax.lax.rsqrt(var + EPS)         # (1, Cin)
        shift = b_ref[...] - mean * scale
        x = x_ref[...].astype(jnp.float32)
        x = x * scale[None, None] + shift[None, None]         # (1,Hin,Win,Cin)
        if apply_lrelu:
            x = jnp.where(x > 0, x, 0.2 * x)                  # LeakyReLU(0.2)
        x = x.astype(jnp.bfloat16)

        tb, hin, win, cin = x.shape
        s_mat = s_ref[...]                                    # (3*Wout, Win)
        wout = s_mat.shape[0] // 3

        # ---- W axis: fused nearest-upsample + the 3 dx taps (incl. the zero
        #      halo) as ONE batched 0/1-matrix matmul on the MXU -------------
        xb = x.reshape(tb * hin, win, cin)
        sb = jnp.broadcast_to(s_mat[None], (tb * hin,) + s_mat.shape)
        xw = jax.lax.dot_general(
            sb, xb, (((2,), (1,)), ((0,), (0,))),
            preferred_element_type=jnp.float32).astype(jnp.bfloat16)
        xw = xw.reshape(tb, hin, 3 * wout, cin)               # (tb,Hin,3Wout,Cin)

        # ---- H axis: nearest-upsample via leading-dim interleave + dy taps --
        if upsample:
            hout = 2 * hin
            xh = jnp.broadcast_to(
                xw[:, :, None], (tb, hin, 2, 3 * wout, cin)
            ).reshape(tb, hout, 3 * wout, cin)
        else:
            hout = hin
            xh = xw
        zrow = jnp.zeros((tb, 1, 3 * wout, cin), xh.dtype)
        v = [jnp.concatenate([zrow, xh[:, :-1]], axis=1),     # dy=0 (row - 1)
             xh,                                              # dy=1
             jnp.concatenate([xh[:, 1:], zrow], axis=1)]      # dy=2 (row + 1)

        # ---- im2col patches (lane concat, aligned sublane slices) -----------
        taps = [v[dy][:, :, dx * wout:(dx + 1) * wout, :]
                for dy in range(3) for dx in range(3)]
        patches = jnp.concatenate(taps, axis=-1)              # (tb,Hout,Wout,9Cin)
        patches = patches.reshape(tb * hout * wout, 9 * cin)  # bf16, K = 9*Cin

        if final:
            # (nc, 9Cin) x (rows, 9Cin)^T -> (nc, rows): output comes out
            # directly in (nc, H*W) order => lane-dense stores, no XLA
            # transpose after the kernel.  (batch tile == 1)
            logits = jax.lax.dot_general(
                w_ref[...], patches, (((1,), (1,)), ((), ())),
                preferred_element_type=jnp.float32) + bias_ref[...]
            img = pl.reciprocal(1.0 + jnp.exp(-logits), approx=True)  # sigmoid
            out_ref[...] = img[None]                           # (1, nc, H*W)
        else:
            acc = jnp.dot(patches, w_ref[...],
                          preferred_element_type=jnp.float32)  # (rows, Cout)
            # per-tile partial BN stats -> consumed (and summed) downstream
            s1 = jnp.sum(acc, axis=0, keepdims=True)
            s2 = jnp.sum(acc * acc, axis=0, keepdims=True)
            ostats_ref[...] = jnp.concatenate([s1, s2], axis=0)[None]
            cout = acc.shape[-1]
            out_ref[...] = acc.reshape(tb, hout, wout, cout).astype(out_ref.dtype)

    return kernel


# --------------------------------------------------------------- wrappers ---

def linear_bn_stats(z, w, b, gmat):
    B, mp = z.shape[0], w.shape[1]
    c = gmat.shape[1]
    return pl.pallas_call(
        _linear_stats_kernel,
        out_shape=(jax.ShapeDtypeStruct((B, mp), jnp.bfloat16),
                   jax.ShapeDtypeStruct((1, 2, c), jnp.float32)),
        in_specs=[VMEM] * 4,
        out_specs=(VMEM, VMEM),
    )(z, w, b, gmat)


def conv_bn_stage(x, stats_prev, gamma, beta, s_mat, w_mat, *,
                  n_prev, upsample, lrelu):
    B, hin, win, cin = x.shape
    cout = w_mat.shape[1]
    hout = 2 * hin if upsample else hin
    wout = 2 * win if upsample else win
    kern = _make_conv_kernel(upsample=upsample, apply_lrelu=lrelu,
                             inv_n_prev=1.0 / float(n_prev), final=False)
    return pl.pallas_call(
        kern,
        out_shape=(jax.ShapeDtypeStruct((B, hout, wout, cout), jnp.bfloat16),
                   jax.ShapeDtypeStruct((B, 2, cout), jnp.float32)),
        grid=(B,),  # 1 image per step: live blocks stay small enough for v7x
        in_specs=[
            pl.BlockSpec(stats_prev.shape, lambda b: (0, 0, 0)),
            pl.BlockSpec(gamma.shape, lambda b: (0, 0)),
            pl.BlockSpec(beta.shape, lambda b: (0, 0)),
            pl.BlockSpec(s_mat.shape, lambda b: (0, 0)),
            pl.BlockSpec((1, hin, win, cin), lambda b: (b, 0, 0, 0)),
            pl.BlockSpec(w_mat.shape, lambda b: (0, 0)),
        ],
        out_specs=(
            pl.BlockSpec((1, hout, wout, cout), lambda b: (b, 0, 0, 0)),
            pl.BlockSpec((1, 2, cout), lambda b: (b, 0, 0)),
        ),
        compiler_params=pltpu.CompilerParams(
            dimension_semantics=("parallel",)),
    )(stats_prev, gamma, beta, s_mat, x, w_mat)


def conv_sigmoid_stage(x, stats_prev, gamma, beta, s_mat, w_t, bias, *, n_prev):
    B, hin, win, cin = x.shape
    nc = w_t.shape[0]
    hw = hin * win
    kern = _make_conv_kernel(upsample=False, apply_lrelu=True,
                             inv_n_prev=1.0 / float(n_prev), final=True)
    return pl.pallas_call(
        kern,
        out_shape=jax.ShapeDtypeStruct((B, nc, hw), jnp.float32),
        grid=(B,),
        in_specs=[
            pl.BlockSpec(stats_prev.shape, lambda b: (0, 0, 0)),
            pl.BlockSpec(gamma.shape, lambda b: (0, 0)),
            pl.BlockSpec(beta.shape, lambda b: (0, 0)),
            pl.BlockSpec(s_mat.shape, lambda b: (0, 0)),
            pl.BlockSpec((1, hin, win, cin), lambda b: (b, 0, 0, 0)),
            pl.BlockSpec(w_t.shape, lambda b: (0, 0)),
            pl.BlockSpec(bias.shape, lambda b: (0, 0)),
        ],
        out_specs=pl.BlockSpec((1, nc, hw), lambda b: (b, 0, 0)),
        compiler_params=pltpu.CompilerParams(
            dimension_semantics=("parallel",)),
    )(stats_prev, gamma, beta, s_mat, x, w_t, bias)


# --------------------------------------------------- parameter preparation ---

def _cpad(c):
    return ((c + LANE - 1) // LANE) * LANE


def _pad_last(x, target):
    pad = target - x.shape[-1]
    if pad == 0:
        return x
    return jnp.pad(x, [(0, 0)] * (x.ndim - 1) + [(0, pad)])


def _make_wtap_matrix(win, upsample):
    """0/1 matrix (3*Wout, Win).  Row dx*Wout+xo selects the input column that
    conv tap dx of output column xo reads from the (optionally 2x nearest
    upsampled) zero-padded input; all-zero rows implement the zero halo."""
    wout = 2 * win if upsample else win
    blocks = []
    for dx in range(3):
        m = np.zeros((wout, win), np.float32)
        for xo in range(wout):
            src = xo + dx - 1
            if 0 <= src < wout:
                m[xo, src // 2 if upsample else src] = 1.0
        blocks.append(m)
    return jnp.asarray(np.concatenate(blocks, axis=0), jnp.bfloat16)


def make_params(key, nz, ngf, img_size, nc):
    """Logical (PyTorch-layout, f32) parameters of a freshly built Generator."""
    init = img_size // 4
    ngf2 = ngf * 2
    ks = jax.random.split(key, 6)

    def unif(k, shape, fan_in):
        bound = 1.0 / jnp.sqrt(jnp.float32(fan_in))
        return jax.random.uniform(k, shape, jnp.float32, -bound, bound)

    return {
        "l1_w": unif(ks[0], (nz, ngf2 * init * init), nz),
        "l1_b": unif(ks[1], (ngf2 * init * init,), nz),
        "bn0_g": jnp.ones((ngf2,), jnp.float32),
        "bn0_b": jnp.zeros((ngf2,), jnp.float32),
        "conv1_w": unif(ks[2], (3, 3, ngf2, ngf2), 9 * ngf2),
        "bn1_g": jnp.ones((ngf2,), jnp.float32),
        "bn1_b": jnp.zeros((ngf2,), jnp.float32),
        "conv2_w": unif(ks[3], (3, 3, ngf2, ngf), 9 * ngf2),
        "bn2_g": jnp.ones((ngf,), jnp.float32),
        "bn2_b": jnp.zeros((ngf,), jnp.float32),
        "conv3_w": unif(ks[4], (3, 3, ngf, nc), 9 * ngf),
        "conv3_b": unif(ks[5], (nc,), 9 * ngf),
    }


def prepare_params(p, nz, ngf, img_size, nc):
    """Kernel-ready parameters: NHWC-permuted linear weight, channels padded to
    128 lanes (padded channels stay exactly zero end-to-end), bf16 MXU weights,
    im2col-reshaped conv weights, W-tap selection matrices."""
    init = img_size // 4
    ngf2 = ngf * 2
    c0, c1, c2 = _cpad(ngf2), _cpad(ngf2), _cpad(ngf)

    lw = p["l1_w"].reshape(nz, ngf2, init, init).transpose(0, 2, 3, 1)
    lw = _pad_last(lw, c0).reshape(nz, init * init * c0).astype(jnp.bfloat16)
    lb = p["l1_b"].reshape(ngf2, init, init).transpose(1, 2, 0)
    lb = _pad_last(lb, c0).reshape(1, init * init * c0)
    gmat = jnp.tile(jnp.eye(c0, dtype=jnp.float32), (init * init, 1))

    def conv_mat(w, cin_p, cout_p):
        w = _pad_last(w, cout_p)
        w = jnp.pad(w, ((0, 0), (0, 0), (0, cin_p - w.shape[2]), (0, 0)))
        return w.reshape(9 * cin_p, cout_p).astype(jnp.bfloat16)

    w3 = jnp.pad(p["conv3_w"], ((0, 0), (0, 0), (0, c2 - ngf), (0, 0)))
    padvec = lambda v, c: _pad_last(v.reshape(1, -1), c)

    return {
        "l1_w": lw, "l1_b": lb, "gmat": gmat,
        "bn0_g": padvec(p["bn0_g"], c0), "bn0_b": padvec(p["bn0_b"], c0),
        "bn1_g": padvec(p["bn1_g"], c1), "bn1_b": padvec(p["bn1_b"], c1),
        "bn2_g": padvec(p["bn2_g"], c2), "bn2_b": padvec(p["bn2_b"], c2),
        "w1": conv_mat(p["conv1_w"], c0, c1),
        "w2": conv_mat(p["conv2_w"], c1, c2),
        "w3t": w3.reshape(9 * c2, nc).T.astype(jnp.bfloat16),
        "b3": p["conv3_b"].reshape(nc, 1),
        "s1": _make_wtap_matrix(init, True),
        "s2": _make_wtap_matrix(2 * init, True),
        "s3": _make_wtap_matrix(4 * init, False),
    }


# -------------------------------------------------------------- generator ---

def generator_forward(z, kp, nz, ngf, img_size, nc):
    init = img_size // 4
    B = z.shape[0]
    c0 = kp["bn0_g"].shape[1]

    out, stats0 = linear_bn_stats(z, kp["l1_w"], kp["l1_b"], kp["gmat"])
    x0 = out.reshape(B, init, init, c0)          # already NHWC-ordered: free

    y1, stats1 = conv_bn_stage(x0, stats0, kp["bn0_g"], kp["bn0_b"],
                               kp["s1"], kp["w1"],
                               n_prev=B * init * init,
                               upsample=True, lrelu=False)
    y2, stats2 = conv_bn_stage(y1, stats1, kp["bn1_g"], kp["bn1_b"],
                               kp["s2"], kp["w2"],
                               n_prev=B * (2 * init) ** 2,
                               upsample=True, lrelu=True)
    img = conv_sigmoid_stage(y2, stats2, kp["bn2_g"], kp["bn2_b"],
                             kp["s3"], kp["w3t"], kp["b3"],
                             n_prev=B * (4 * init) ** 2)
    return img.reshape(B, nc, img_size, img_size)  # free metadata reshape


# ------------------------------------------------------- pure-JAX reference --

def _ref_forward(z, p, nz, ngf, img_size, nc):
    init = img_size // 4
    B = z.shape[0]

    def bn(x, g, b):
        m = x.mean(axis=(0, 1, 2), keepdims=True)
        v = ((x - m) ** 2).mean(axis=(0, 1, 2), keepdims=True)
        return (x - m) * jax.lax.rsqrt(v + EPS) * g.reshape(1, 1, 1, -1) \
            + b.reshape(1, 1, 1, -1)

    up = lambda x: jnp.repeat(jnp.repeat(x, 2, axis=1), 2, axis=2)
    conv = lambda x, w: jax.lax.conv_general_dilated(
        x, w, (1, 1), "SAME", dimension_numbers=("NHWC", "HWIO", "NHWC"))

    out = z @ p["l1_w"] + p["l1_b"]
    x = out.reshape(B, ngf * 2, init, init).transpose(0, 2, 3, 1)
    x = bn(x, p["bn0_g"], p["bn0_b"])
    x = up(x)
    x = bn(conv(x, p["conv1_w"]), p["bn1_g"], p["bn1_b"])
    x = jnp.where(x > 0, x, 0.2 * x)
    x = up(x)
    x = bn(conv(x, p["conv2_w"]), p["bn2_g"], p["bn2_b"])
    x = jnp.where(x > 0, x, 0.2 * x)
    x = jax.nn.sigmoid(conv(x, p["conv3_w"]) + p["conv3_b"])
    return x.transpose(0, 3, 1, 2)


# ------------------------------------------------------------------- main ---

if __name__ == "__main__":
    nz, ngf, img_size, nc = 8, 8, 16, 3
    batch = 2

    key = jax.random.PRNGKey(0)
    k_param, k_z = jax.random.split(key)
    params = make_params(k_param, nz, ngf, img_size, nc)
    kparams = prepare_params(params, nz, ngf, img_size, nc)
    z = jax.random.normal(k_z, (batch, nz), jnp.float32)

    img = generator_forward(z, kparams, nz, ngf, img_size, nc)
    img = jax.block_until_ready(img)
    assert img.shape == (batch, nc, img_size, img_size), img.shape

    ref = jax.block_until_ready(_ref_forward(z, params, nz, ngf, img_size, nc))
    err = float(jnp.max(jnp.abs(img - ref)))
    # bf16 MXU inputs + approx-reciprocal sigmoid vs. an all-f32 reference.
    assert err < 2e-2, err

    print("KERNEL_OK")
</pallas_src>

<mosaic_0001>
module attributes {stable_mosaic.version = 11 : i64} {
  func.func @_linear_stats_kernel(%arg0: memref<2x8xf32, #tpu.memory_space<vmem>>, %arg1: memref<8x2048xbf16, #tpu.memory_space<vmem>>, %arg2: memref<1x2048xf32, #tpu.memory_space<vmem>>, %arg3: memref<2048x128xf32, #tpu.memory_space<vmem>>, %arg4: memref<2x2048xbf16, #tpu.memory_space<vmem>>, %arg5: memref<1x2x128xf32, #tpu.memory_space<vmem>>) attributes {dimension_semantics = [], scalar_prefetch = 0 : i64, scratch_operands = 0 : i64, tpu.core_type = #tpu.core_type<tc>} {
    %c0 = arith.constant 0 : index
    %c0_0 = arith.constant 0 : index
    %0 = vector.load %arg0[%c0, %c0_0] : memref<2x8xf32, #tpu.memory_space<vmem>>, vector<2x8xf32>
    %1 = arith.truncf %0 : vector<2x8xf32> to vector<2x8xbf16>
    %c0_1 = arith.constant 0 : index
    %c0_2 = arith.constant 0 : index
    %2 = vector.load %arg1[%c0_1, %c0_2] : memref<8x2048xbf16, #tpu.memory_space<vmem>>, vector<8x2048xbf16>
    %cst = arith.constant dense<0.000000e+00> : vector<2x2048xf32>
    %3 = tpu.matmul %1, %2, %cst {dimension_numbers = #tpu.dot_dimension_numbers<[1], [0], [0], [1], [0, 0, 1, 1], [], []>} : vector<2x8xbf16>, vector<8x2048xbf16>, vector<2x2048xf32> -> vector<2x2048xf32>
    %c0_3 = arith.constant 0 : index
    %c0_4 = arith.constant 0 : index
    %4 = vector.load %arg2[%c0_3, %c0_4] : memref<1x2048xf32, #tpu.memory_space<vmem>>, vector<1x2048xf32>
    %5 = vector.broadcast %4 : vector<1x2048xf32> to vector<2x2048xf32>
    %6 = arith.addf %3, %5 : vector<2x2048xf32>
    %cst_5 = arith.constant dense<0.000000e+00> : vector<2048xf32>
    %7 = vector.multi_reduction <add>, %6, %cst_5 [0] : vector<2x2048xf32> to vector<2048xf32>
    %8 = vector.shape_cast %7 : vector<2048xf32> to vector<1x2048xf32>
    %9 = arith.mulf %6, %6 : vector<2x2048xf32>
    %cst_6 = arith.constant dense<0.000000e+00> : vector<2048xf32>
    %10 = vector.multi_reduction <add>, %9, %cst_6 [0] : vector<2x2048xf32> to vector<2048xf32>
    %11 = vector.shape_cast %10 : vector<2048xf32> to vector<1x2048xf32>
    %c0_7 = arith.constant 0 : index
    %c0_8 = arith.constant 0 : index
    %12 = vector.load %arg3[%c0_7, %c0_8] : memref<2048x128xf32, #tpu.memory_space<vmem>>, vector<2048x128xf32>
    %cst_9 = arith.constant dense<0.000000e+00> : vector<1x128xf32>
    %13 = tpu.matmul %8, %12, %cst_9 {dimension_numbers = #tpu.dot_dimension_numbers<[1], [0], [0], [1], [0, 0, 1, 1], [], []>} : vector<1x2048xf32>, vector<2048x128xf32>, vector<1x128xf32> -> vector<1x128xf32>
    %c0_10 = arith.constant 0 : index
    %c0_11 = arith.constant 0 : index
    %14 = vector.load %arg3[%c0_10, %c0_11] : memref<2048x128xf32, #tpu.memory_space<vmem>>, vector<2048x128xf32>
    %cst_12 = arith.constant dense<0.000000e+00> : vector<1x128xf32>
    %15 = tpu.matmul %11, %14, %cst_12 {dimension_numbers = #tpu.dot_dimension_numbers<[1], [0], [0], [1], [0, 0, 1, 1], [], []>} : vector<1x2048xf32>, vector<2048x128xf32>, vector<1x128xf32> -> vector<1x128xf32>
    %16 = tpu.concatenate %13, %15 in 0 : vector<1x128xf32>, vector<1x128xf32> -> vector<2x128xf32>
    %17 = vector.shape_cast %16 : vector<2x128xf32> to vector<1x2x128xf32>
    %c0_13 = arith.constant 0 : index
    %c0_14 = arith.constant 0 : index
    %c0_15 = arith.constant 0 : index
    %18 = vector.load %arg5[%c0_13, %c0_14, %c0_15] : memref<1x2x128xf32, #tpu.memory_space<vmem>>, vector<1x2x128xf32>
    tpu.vector_store %arg5[%c0_13, %c0_14, %c0_15], %17 {strides = array<i32>} : memref<1x2x128xf32, #tpu.memory_space<vmem>>, vector<1x2x128xf32>,
    %19 = arith.truncf %6 : vector<2x2048xf32> to vector<2x2048xbf16>
    %c0_16 = arith.constant 0 : index
    %c0_17 = arith.constant 0 : index
    %20 = vector.load %arg4[%c0_16, %c0_17] : memref<2x2048xbf16, #tpu.memory_space<vmem>>, vector<2x2048xbf16>
    tpu.vector_store %arg4[%c0_16, %c0_17], %19 {strides = array<i32>} : memref<2x2048xbf16, #tpu.memory_space<vmem>>, vector<2x2048xbf16>,
    return
  }
}

</mosaic_0001>

<bundles_post_ra>
// kernel: tpu_custom_call.1
= control target key start
LH: loop header
LB: loop body
LE: loop exit
PB: predicated region body
PF: predicated region fallthrough
CT: control target
= control target key end

     0   :  { %11 = vsyncpa [#allocation3], 0  ;;  %s4601_s0 = inlined_call_operand.hbm [shape: f32[2,8], index: 0, kind: input, shape index: {}]   ;;  %s4602_s1 = inlined_call_operand.hbm [shape: bf16[8,2048], index: 1, kind: input, shape index: {}]   ;;  %s4603_s2 = inlined_call_operand.hbm [shape: f32[1,2048], index: 2, kind: input, shape index: {}]   ;;  %s4604_s3 = inlined_call_operand.hbm [shape: f32[2048,128], index: 3, kind: input, shape index: {}]   ;;  %s4605_s4 = inlined_call_operand.hbm [shape: bf16[2,2048], index: 4, kind: output, shape index: {0}]   ;;  %s4606_s5 = inlined_call_operand.hbm [shape: f32[1,2,128], index: 5, kind: output, shape index: {1}]  }
   0x1   :  { %12 = vsyncpa [#allocation6], 0 }
   0x2   :  { %13 = vsyncpa [#allocation9], 0 }
   0x3   :  { %14 = vsyncpa [#allocation4], 0 }
   0x4   :  { %15 = vsyncpa [#allocation12], 0  ;;  %s3654_s18 = smov [#allocation5]   ;;  %s3655_s20 = smov [#allocation2]  }
   0x5   :  { %s32_s19 = sshll.u32 %s3654_s18, 4  ;;  %s22_s21 = sshll.u32 %s3655_s20, 4  ;;  %s33_s19 = int_to_ptr.vmem [resolvable:$true] %s32_s19  ;;  %s23_s21 = int_to_ptr.vmem [resolvable:$true] %s22_s21 }
   0x6   :  { %s3512_s24 = scalar_lea.hbm %s4602_s1, 1024 }
   0x7   :  { %p3513_p0 = scmp.ne.s32.totalorder %s4602_s1, %s3512_s24  ;;  %p3516_p1 = scmp.lt.u32.totalorder %s3512_s24, %s4602_s1 }
   0x9   :  { %p3518_p2 = pnand %p3516_p1, %p3513_p0 }
   0xb   :  { %3521 = shalt.err (!%p3518_p2)
}
   0xc   :  { %s3522_s29 = scalar_lea.vmem %s33_s19, 1024  ;;  %p3527_p4 = scmp.lt.s32.totalorder %s33_s19, %s33_s19 }
   0xd   :  { %p3523_p3 = scmp.ne.s32.totalorder %s33_s19, %s3522_s29  ;;  %p3528_p5 = scmp.lt.s32.totalorder %s3522_s29, %s3522_s29 }
   0xf   :  { %p3529_p6 = por %p3528_p5, %p3527_p4 }
  0x11   :  { %p3530_p7 = pnand %p3529_p6, %p3523_p3 }
  0x13   :  { %3533 = shalt.err (!%p3530_p7)
}
  0x14   :  { %35 = dma.hbm_to_vmem [thread:$0]  %s4602_s1, 1024, %s33_s19, [#allocation6]  }
  0x15   :  { %s3534_s9 = scalar_lea.hbm %s4601_s0, 32 }
  0x16   :  { %p3535_p8 = scmp.ne.s32.totalorder %s4601_s0, %s3534_s9  ;;  %p3538_p9 = scmp.lt.u32.totalorder %s3534_s9, %s4601_s0 }
  0x18   :  { %p3540_p10 = pnand %p3538_p9, %p3535_p8 }
  0x1a   :  { %3543 = shalt.err (!%p3540_p10)
}
  0x1b   :  { %s3544_s14 = scalar_lea.vmem %s23_s21, 32  ;;  %p3549_p12 = scmp.lt.s32.totalorder %s23_s21, %s23_s21 }
  0x1c   :  { %p3545_p11 = scmp.ne.s32.totalorder %s23_s21, %s3544_s14  ;;  %p3550_p13 = scmp.lt.s32.totalorder %s3544_s14, %s3544_s14 }
  0x1e   :  { %p3551_p0 = por %p3550_p13, %p3549_p12 }
  0x20   :  { %p3552_p1 = pnand %p3551_p0, %p3545_p11 }
  0x22   :  { %3555 = shalt.err (!%p3552_p1)
}
  0x23   :  { %25 = dma.hbm_to_vmem [thread:$0]  %s4601_s0, 32, %s23_s21, [#allocation3]  }
  0x24   :  { %s3656_s16 = smov [#allocation7]   ;;  %s3657_s18 = smov [#allocation8]  }
  0x25   :  { %s42_s17 = sshll.u32 %s3656_s16, 4  ;;  %s51_s19 = sshll.u32 %s3657_s18, 4  ;;  %s43_s17 = int_to_ptr.vmem [resolvable:$true] %s42_s17  ;;  %s3718_s19 = int_to_ptr.vmem [resolvable:$true] %s51_s19 }
  0x26   :  { %s3556_s23 = scalar_lea.hbm %s4603_s2, 256 }
  0x27   :  { %p3557_p2 = scmp.ne.s32.totalorder %s4603_s2, %s3556_s23  ;;  %p3560_p3 = scmp.lt.u32.totalorder %s3556_s23, %s4603_s2 }
  0x29   :  { %p3562_p4 = pnand %p3560_p3, %p3557_p2 }
  0x2b   :  { %3565 = shalt.err (!%p3562_p4)
}
  0x2c   :  { %s3566_s0 = scalar_lea.vmem %s43_s17, 256  ;;  %p3571_p6 = scmp.lt.s32.totalorder %s43_s17, %s43_s17 }
  0x2d   :  { %p3567_p5 = scmp.ne.s32.totalorder %s43_s17, %s3566_s0  ;;  %p3572_p7 = scmp.lt.s32.totalorder %s3566_s0, %s3566_s0 }
  0x2f   :  { %p3573_p8 = por %p3572_p7, %p3571_p6 }
  0x31   :  { %p3574_p9 = pnand %p3573_p8, %p3567_p5 }
  0x33   :  { %3577 = shalt.err (!%p3574_p9)
}
  0x34   :  { %45 = dma.hbm_to_vmem [thread:$0]  %s4603_s2, 256, %s43_s17, [#allocation6]  }
  0x35   :  { %s3578_s6 = scalar_lea.hbm %s4604_s3, 32768 }
  0x36   :  { %p3579_p10 = scmp.ne.s32.totalorder %s4604_s3, %s3578_s6  ;;  %p3582_p11 = scmp.lt.u32.totalorder %s3578_s6, %s4604_s3 }
  0x38   :  { %p3584_p12 = pnand %p3582_p11, %p3579_p10 }
  0x3a   :  { %3587 = shalt.err (!%p3584_p12)
}
  0x3b   :  { %s3588_s11 = scalar_lea.vmem %s3718_s19, 32768  ;;  %p3593_p0 = scmp.lt.s32.totalorder %s3718_s19, %s3718_s19 }
  0x3c   :  { %p3589_p13 = scmp.ne.s32.totalorder %s3718_s19, %s3588_s11  ;;  %p3594_p1 = scmp.lt.s32.totalorder %s3588_s11, %s3588_s11 }
  0x3e   :  { %p3595_p2 = por %p3594_p1, %p3593_p0 }
  0x40   :  { %p3596_p3 = pnand %p3595_p2, %p3589_p13 }
  0x42   :  { %3599 = shalt.err (!%p3596_p3)
}
  0x43   :  { %s3658_s2 = smov 128   ;;  %s3659_s12 = smov 8  }
  0x44   :  { %57 = dma.hbm_to_vmem [thread:$0]  %s4604_s3, 32768, %s3718_s19, [#allocation9], %s3658_s2, %s3658_s2, %s3659_s12  }
  0x45   :  { %3644 = dma.done.wait [#allocation3], 32  }
  0x46   :  { %3645 = vsyncadd [#allocation3], 4294967264 }
  0x47   :  { %3646 = dma.done.wait [#allocation6], 1280  }
  0x48   :  { %3647 = vsyncadd [#allocation6], 4294966016 }
  0x49   :  { %3648 = dma.done.wait [#allocation9], 32768  }
  0x4a   :  { %3649 = vsyncadd [#allocation9], 4294934528  ;;  %v3660_v0 = vmov 0   ;;  %v73_v1 = vld [vmem:[#allocation5] sm:$0xff]  ;;  %vm209_vm0 = vcmask 1043456   ;;  %v74_v2 = vld [vmem:[#allocation5 + $0x8] sm:$0xff] }
  0x4b   :  { %290 = vmatprep.mubr.bf16.mxu0 %v3660_v0  ;;  %331 = vmatprep.mubr.bf16.mxu1 %v3660_v0  ;;  %v71_v3 = vld [vmem:[#allocation2] sm:$0x3]  ;;  %v2375_v4 = vcombine.high %v73_v1, %v73_v1  ;;  %v2377_v5 = vcombine.high %v74_v2, %v74_v2  ;;  %v2374_v6 = vcombine.low %v73_v1, %v73_v1  ;;  %v75_v8 = vld [vmem:[#allocation5 + $0x10] sm:$0xff]  ;;  %v77_v17 = vld [vmem:[#allocation5 + $0x20] sm:$0xff]  ;;  %vm205_vm1 = vcmask 64512   ;;  %s3662_s3 = smov [#allocation10]  }
  0x4c   :  { %v2376_v7 = vcombine.low %v74_v2, %v74_v2  ;;  %v76_v9 = vld [vmem:[#allocation5 + $0x18] sm:$0xff]  ;;  %v2379_v10 = vcombine.high %v75_v8, %v75_v8  ;;  %v2378_v12 = vcombine.low %v75_v8, %v75_v8  ;;  %v3755_v15 = vpack.c.bf16 %v71_v3, %v71_v3  ;;  %v78_v18 = vld [vmem:[#allocation5 + $0x28] sm:$0xff]  ;;  %v79_v25 = vld [vmem:[#allocation5 + $0x30] sm:$0xff]  ;;  %s2349_s1 = sshll.u32 %s3662_s3, 4  ;;  %s2350_s1 = int_to_ptr.vmem [resolvable:$true] %s2349_s1 }
  0x4d   :  { %v2381_v11 = vcombine.high %v76_v9, %v76_v9  ;;  %2390 = vmatprep.subr.msk.bf16.mxu0 %vm209_vm0, %v2375_v4  ;;  %2392 = vmatprep.subr.msk.bf16.mxu1 %vm209_vm0, %v2377_v5  ;;  %v211_v13 = vsel %vm209_vm0, %v2374_v6, 0  ;;  %v2380_v16 = vcombine.low %v76_v9, %v76_v9  ;;  %v2383_v21 = vcombine.high %v77_v17, %v77_v17  ;;  %v80_v26 = vld [vmem:[#allocation5 + $0x38] sm:$0xff]  ;;  %v843_v33 = vld [vmem:[#allocation8 + $0x80] sm:$0xff]  ;;  %v845_v45 = vld [vmem:[#allocation8 + $0x90] sm:$0xff]  ;;  %s3600_s15 = scalar_lea.vmem %s2350_s1, 256  ;;  %p3605_p5 = scmp.lt.s32.totalorder %s2350_s1, %s2350_s1 }
  0x4e   :  { %v217_v14 = vsel %vm209_vm0, %v2376_v7, 0  ;;  %259 = vmatpush1.bf16.msra.mxu0 %v211_v13  ;;  %v223_v19 = vsel %vm209_vm0, %v2378_v12, 0  ;;  %v2385_v22 = vcombine.high %v78_v18, %v78_v18  ;;  %v2382_v23 = vcombine.low %v77_v17, %v77_v17  ;;  %v844_v34 = vld [vmem:[#allocation8 + $0x88] sm:$0xff]  ;;  %v875_v35 = vld [vmem:[#allocation8 + $0x180] sm:$0xff]  ;;  %v846_v46 = vld [vmem:[#allocation8 + $0x98] sm:$0xff]  ;;  %p3601_p4 = scmp.ne.s32.totalorder %s2350_s1, %s3600_s15  ;;  %p3606_p6 = scmp.lt.s32.totalorder %s3600_s15, %s3600_s15 }
  0x4f   :  { %300 = vmatpush1.bf16.msra.mxu1 %v217_v14  ;;  %2394 = vmatprep.subr.msk.bf16.mxu0 %vm209_vm0, %v2379_v10  ;;  %v229_v20 = vsel %vm209_vm0, %v2380_v16, 0  ;;  %v2384_v24 = vcombine.low %v78_v18, %v78_v18  ;;  %v2387_v29 = vcombine.high %v79_v25, %v79_v25  ;;  %v2389_v30 = vcombine.high %v80_v26, %v80_v26  ;;  %v876_v36 = vld [vmem:[#allocation8 + $0x188] sm:$0xff]  ;;  %v827_v41 = vld [vmem:[#allocation8] sm:$0xff]  ;;  %v877_v47 = vld [vmem:[#allocation8 + $0x190] sm:$0xff] }
  0x50   :  { %2396 = vmatprep.subr.msk.bf16.mxu1 %vm209_vm0, %v2381_v11  ;;  %v235_v27 = vsel %vm209_vm0, %v2382_v23, 0  ;;  %v2386_v31 = vcombine.low %v79_v25, %v79_v25  ;;  %v2388_v32 = vcombine.low %v80_v26, %v80_v26  ;;  %v3781_v39 = vpack.c.bf16 %v844_v34, %v843_v33  ;;  %v828_v42 = vld [vmem:[#allocation8 + $0x8] sm:$0xff]  ;;  %v859_v43 = vld [vmem:[#allocation8 + $0x100] sm:$0xff]  ;;  %v878_v48 = vld [vmem:[#allocation8 + $0x198] sm:$0xff]  ;;  %p3607_p7 = por %p3606_p6, %p3605_p5 }
  0x51   :  { %2391 = vmatmul.mubr.msk.bf16.vlgmr.msra.gmra.mrb[0].mxu0 %vm205_vm1, %v3755_v15  ;;  %v241_v28 = vsel %vm209_vm0, %v2384_v24, 0  ;;  %v3783_v40 = vpack.c.bf16 %v876_v36, %v875_v35  ;;  %v860_v44 = vld [vmem:[#allocation8 + $0x108] sm:$0xff]  ;;  %v3793_v49 = vpack.c.bf16 %v828_v42, %v827_v41  ;;  %v829_v51 = vld [vmem:[#allocation8 + $0x10] sm:$0xff]  ;;  %v830_v52 = vld [vmem:[#allocation8 + $0x18] sm:$0xff]  ;;  %v3797_v53 = vpack.c.bf16 %v846_v46, %v845_v45 }
  0x52   :  { %2393 = vmatmul.mubr.msk.bf16.vlgmr.msra.gmra.mrb[0].mxu1 %vm205_vm1, %v3755_v15  ;;  %341 = vmatpush1.bf16.msra.mxu0 %v223_v19  ;;  %v247_v37 = vsel %vm209_vm0, %v2386_v31, 0  ;;  %v253_v38 = vsel %vm209_vm0, %v2388_v32, 0  ;;  %v3795_v50 = vpack.c.bf16 %v860_v44, %v859_v43  ;;  %v3799_v54 = vpack.c.bf16 %v878_v48, %v877_v47  ;;  %v861_v55 = vld [vmem:[#allocation8 + $0x110] sm:$0xff]  ;;  %v862_v56 = vld [vmem:[#allocation8 + $0x118] sm:$0xff]  ;;  %v847_v57 = vld [vmem:[#allocation8 + $0xa0] sm:$0xff]  ;;  %p3608_p8 = pnand %p3607_p7, %p3601_p4 }
  0x53   :  { %382 = vmatpush1.bf16.msra.mxu1 %v229_v20  ;;  %372 = vmatprep.mubr.bf16.mxu0 %v3660_v0  ;;  %v848_v58 = vld [vmem:[#allocation8 + $0xa8] sm:$0xff]  ;;  %v879_v59 = vld [vmem:[#allocation8 + $0x1a0] sm:$0xff]  ;;  %v3807_v61 = vpack.c.bf16 %v830_v52, %v829_v51  ;;  %v3809_v62 = vpack.c.bf16 %v862_v56, %v861_v55  ;;  %v849_v5 = vld [vmem:[#allocation8 + $0xb0] sm:$0xff]  ;;  %vm586_vm2 = vcmask 1041408  }
  0x54   :  { %413 = vmatprep.mubr.bf16.mxu1 %v3660_v0  ;;  %2398 = vmatprep.subr.msk.bf16.mxu0 %vm209_vm0, %v2383_v21  ;;  %v880_v60 = vld [vmem:[#allocation8 + $0x1a8] sm:$0xff]  ;;  %v831_v63 = vld [vmem:[#allocation8 + $0x20] sm:$0xff]  ;;  %v3813_v1 = vpack.c.bf16 %v848_v58, %v847_v57  ;;  %v850_v6 = vld [vmem:[#allocation8 + $0xb8] sm:$0xff] }
  0x55   :  { %2400 = vmatprep.subr.msk.bf16.mxu1 %vm209_vm0, %v2385_v22  ;;  %v3815_v2 = vpack.c.bf16 %v880_v60, %v879_v59  ;;  %v863_v3 = vld [vmem:[#allocation8 + $0x120] sm:$0xff]  ;;  %v864_v4 = vld [vmem:[#allocation8 + $0x128] sm:$0xff]  ;;  %v881_v7 = vld [vmem:[#allocation8 + $0x1b0] sm:$0xff]  ;;  %v3825_v12 = vpack.c.bf16 %v850_v6, %v849_v5 }
  0x56   :  { %v882_v8 = vld [vmem:[#allocation8 + $0x1b8] sm:$0xff]  ;;  %v3821_v10 = vpack.c.bf16 %v864_v4, %v863_v3  ;;  %v833_v11 = vld [vmem:[#allocation8 + $0x30] sm:$0xff]  ;;  %v851_v19 = vld [vmem:[#allocation8 + $0xc0] sm:$0xff] }
  0x57   :  { %4710 = vst [vmem:[#allocation18_spill] sm:$0xff] %v3815_v2  ;;  %4713 = vst [vmem:[#allocation21_spill] sm:$0xff] %v3825_v12  ;;  %v3827_v13 = vpack.c.bf16 %v882_v8, %v881_v7  ;;  %v834_v14 = vld [vmem:[#allocation8 + $0x38] sm:$0xff]  ;;  %v852_v20 = vld [vmem:[#allocation8 + $0xc8] sm:$0xff] }
  0x58   :  { %4712 = vst [vmem:[#allocation20_spill] sm:$0xff] %v3821_v10  ;;  %v866_v16 = vld [vmem:[#allocation8 + $0x138] sm:$0xff]  ;;  %v3831_v17 = vpack.c.bf16 %v834_v14, %v833_v11  ;;  %v883_v21 = vld [vmem:[#allocation8 + $0x1c0] sm:$0xff]  ;;  %v3839_v22 = vpack.c.bf16 %v852_v20, %v851_v19  ;;  %v884_v23 = vld [vmem:[#allocation8 + $0x1c8] sm:$0xff] }
  0x59   :  { %2395 = vmatmul.mubr.msk.bf16.vlgmr.msra.gmra.mrb[4].mxu0 %vm205_vm1, %v3755_v15  ;;  %4714 = vst [vmem:[#allocation22_spill] sm:$0xff] %v3827_v13  ;;  %v835_v24 = vld [vmem:[#allocation8 + $0x40] sm:$0xff]  ;;  %v836_v25 = vld [vmem:[#allocation8 + $0x48] sm:$0xff]  ;;  %v3841_v26 = vpack.c.bf16 %v884_v23, %v883_v21  ;;  %v853_v31 = vld [vmem:[#allocation8 + $0xd0] sm:$0xff] }
  0x5a   :  { %2397 = vmatmul.mubr.msk.bf16.vlgmr.msra.gmra.mrb[4].mxu1 %vm205_vm1, %v3755_v15  ;;  %423 = vmatpush1.bf16.msra.mxu0 %v235_v27  ;;  %4715 = vst [vmem:[#allocation23_spill] sm:$0xff] %v3831_v17  ;;  %4717 = vst [vmem:[#allocation25_spill] sm:$0xff] %v3839_v22  ;;  %v3843_v27 = vpack.c.bf16 %v836_v25, %v835_v24  ;;  %v854_v32 = vld [vmem:[#allocation8 + $0xd8] sm:$0xff]  ;;  %v885_v33 = vld [vmem:[#allocation8 + $0x1d0] sm:$0xff] }
  0x5b   :  { %464 = vmatpush1.bf16.msra.mxu1 %v241_v28  ;;  %454 = vmatprep.mubr.bf16.mxu0 %v3660_v0  ;;  %4718 = vst [vmem:[#allocation26_spill] sm:$0xff] %v3841_v26  ;;  %v867_v28 = vld [vmem:[#allocation8 + $0x140] sm:$0xff]  ;;  %v3851_v34 = vpack.c.bf16 %v854_v32, %v853_v31  ;;  %v886_v35 = vld [vmem:[#allocation8 + $0x1d8] sm:$0xff]  ;;  %v837_v36 = vld [vmem:[#allocation8 + $0x50] sm:$0xff] }
  0x5c   :  { %495 = vmatprep.mubr.bf16.mxu1 %v3660_v0  ;;  %2402 = vmatprep.subr.msk.bf16.mxu0 %vm209_vm0, %v2387_v29  ;;  %4719 = vst [vmem:[#allocation27_spill] sm:$0xff] %v3843_v27  ;;  %v868_v29 = vld [vmem:[#allocation8 + $0x148] sm:$0xff]  ;;  %v869_v42 = vld [vmem:[#allocation8 + $0x150] sm:$0xff]  ;;  %v870_v43 = vld [vmem:[#allocation8 + $0x158] sm:$0xff] }
  0x5d   :  { %2404 = vmatprep.subr.msk.bf16.mxu1 %vm209_vm0, %v2389_v30  ;;  %v3846_v30 = vpack.c.bf16 %v868_v29, %v867_v28  ;;  %4721 = vst [vmem:[#allocation29_spill] sm:$0xff] %v3851_v34  ;;  %v3858_v44 = vpack.c.bf16 %v870_v43, %v869_v42  ;;  %v855_v45 = vld [vmem:[#allocation8 + $0xe0] sm:$0xff]  ;;  %v856_v46 = vld [vmem:[#allocation8 + $0xe8] sm:$0xff]  ;;  %v889_v3 = vld [vmem:[#allocation8 + $0x1f0] sm:$0xff]  ;;  %v85_v28 = vlaneseq }
  0x5e   :  { %v887_v47 = vld [vmem:[#allocation8 + $0x1e0] sm:$0xff]  ;;  %v3863_v48 = vpack.c.bf16 %v856_v46, %v855_v45  ;;  %v888_v51 = vld [vmem:[#allocation8 + $0x1e8] sm:$0xff]  ;;  %v890_v5 = vld [vmem:[#allocation8 + $0x1f8] sm:$0xff] }
  0x5f   :  { %4720 = vst [vmem:[#allocation28_spill] sm:$0xff] %v3846_v30  ;;  %4724 = vst [vmem:[#allocation32_spill] sm:$0xff] %v3858_v44  ;;  %v839_v52 = vld [vmem:[#allocation8 + $0x60] sm:$0xff]  ;;  %v840_v55 = vld [vmem:[#allocation8 + $0x68] sm:$0xff]  ;;  %v3865_v56 = vpack.c.bf16 %v888_v51, %v887_v47  ;;  %v3877_v8 = vpack.c.bf16 %v890_v5, %v889_v3  ;;  %v3893_v29 = vshrl.u32 %v85_v28, 7 }
  0x60   :  { %4725 = vst [vmem:[#allocation33_spill] sm:$0xff] %v3863_v48  ;;  %v3867_v57 = vpack.c.bf16 %v840_v55, %v839_v52  ;;  %v871_v58 = vld [vmem:[#allocation8 + $0x160] sm:$0xff]  ;;  %v872_v59 = vld [vmem:[#allocation8 + $0x168] sm:$0xff]  ;;  %v841_v6 = vld [vmem:[#allocation8 + $0x70] sm:$0xff] }
  0x61   :  { %2399 = vmatmul.mubr.msk.bf16.vlgmr.msra.gmra.mrb[8].mxu0 %vm205_vm1, %v3755_v15  ;;  %4726 = vst [vmem:[#allocation34_spill] sm:$0xff] %v3865_v56  ;;  %v3870_v60 = vpack.c.bf16 %v872_v59, %v871_v58  ;;  %v842_v7 = vld [vmem:[#allocation8 + $0x78] sm:$0xff]  ;;  %4730 = vst [vmem:[#allocation38_spill] sm:$0xff] %v3877_v8  ;;  %v873_v14 = vld [vmem:[#allocation8 + $0x170] sm:$0xff]  ;;  %v4611_v31 = vsub.s32 0, %v3893_v29  ;;  %v4608_v32 = vsub.s32 2, %v3893_v29 }
  0x62   :  { %2401 = vmatmul.mubr.msk.bf16.vlgmr.msra.gmra.mrb[8].mxu1 %vm205_vm1, %v3755_v15  ;;  %505 = vmatpush1.bf16.msra.mxu0 %v247_v37  ;;  %v838_v37 = vld [vmem:[#allocation8 + $0x58] sm:$0xff]  ;;  %4727 = vst [vmem:[#allocation35_spill] sm:$0xff] %v3867_v57  ;;  %v3879_v11 = vpack.c.bf16 %v842_v7, %v841_v6  ;;  %v907_v19 = vld [vmem:[#allocation8 + $0x280] sm:$0xff]  ;;  %v908_v20 = vld [vmem:[#allocation8 + $0x288] sm:$0xff]  ;;  %v4607_v42 = vsub.s32 3, %v3893_v29 }
  0x63   :  { %546 = vmatpush1.bf16.msra.mxu1 %v253_v38  ;;  %536 = vmatprep.mubr.bf16.mxu0 %v3660_v0  ;;  %v3853_v38 = vpack.c.bf16 %v886_v35, %v885_v33  ;;  %v3855_v41 = vpack.c.bf16 %v838_v37, %v837_v36  ;;  %4728 = vst [vmem:[#allocation36_spill] sm:$0xff] %v3870_v60  ;;  %v939_v21 = vld [vmem:[#allocation8 + $0x380] sm:$0xff]  ;;  %v940_v24 = vld [vmem:[#allocation8 + $0x388] sm:$0xff]  ;;  %v81_v33 = vld [vmem:[#allocation7] sm:$0xff]  ;;  %v4609_v35 = vsub.s32 1, %v3893_v29 }
  0x64   :  { %577 = vmatprep.mubr.bf16.mxu1 %v3660_v0  ;;  %2975 = vmatprep.subr.bf16.mxu0 %v3781_v39  ;;  %v832_v0 = vld [vmem:[#allocation8 + $0x28] sm:$0xff]  ;;  %4731 = vst [vmem:[#allocation39_spill] sm:$0xff] %v3879_v11  ;;  %v3887_v23 = vpack.c.bf16 %v908_v20, %v907_v19  ;;  %v3889_v25 = vpack.c.bf16 %v940_v24, %v939_v21  ;;  %v3661_v36 = vmov 1966171168   ;;  %v4610_v24 = vsub.s32 4, %v3893_v29 }
  0x65   :  { %3007 = vmatprep.subr.bf16.mxu1 %v3783_v40  ;;  %v3819_v9 = vpack.c.bf16 %v832_v0, %v831_v63  ;;  %4722 = vst [vmem:[#allocation30_spill] sm:$0xff] %v3853_v38  ;;  %4723 = vst [vmem:[#allocation31_spill] sm:$0xff] %v3855_v41  ;;  %v857_v63 = vld [vmem:[#allocation8 + $0xf0] sm:$0xff]  ;;  %v858_v0 = vld [vmem:[#allocation8 + $0xf8] sm:$0xff]  ;;  %v2246_v37 = vunpack.c.l.s4 %v3661_v36  ;;  %v88_v43 = vrot.slane %v81_v33, %v4611_v31 }
  0x66   :  { %v3875_v4 = vpack.c.bf16 %v858_v0, %v857_v63  ;;  %4733 = vst [vmem:[#allocation41_spill] sm:$0xff] %v3887_v23  ;;  %4734 = vst [vmem:[#allocation42_spill] sm:$0xff] %v3889_v25  ;;  %v96_v45 = vrot.slane %v81_v33, %v4608_v32  ;;  %v92_v46 = vrot.slane %v81_v33, %v4609_v35 }
  0x67   :  { %4711 = vst [vmem:[#allocation19_spill] sm:$0xff] %v3819_v9  ;;  %v2247_v47 = vunpack.c.0.s8 %v2246_v37  ;;  %v100_v55 = vrot.slane %v81_v33, %v4607_v42  ;;  %v4614_v37 = vsub.s32 6, %v3893_v29 }
  0x68   :  { %4729 = vst [vmem:[#allocation37_spill] sm:$0xff] %v3875_v4 }
  0x69   :  { %2403 = vmatmul.mubr.msk.bf16.vlgmr.msra.gmra.mrb[12].mxu0 %vm205_vm1, %v3755_v15  ;;  %v3908_v5 = vsub.s32 %v2247_v47, %v3893_v29 }
  0x6a   :  { %2405 = vmatmul.mubr.msk.bf16.vlgmr.msra.gmra.mrb[12].mxu1 %vm205_vm1, %v3755_v15  ;;  %2977 = vmatpush3.bf16.msra.mxu0 %v3793_v49  ;;  %v865_v15 = vld [vmem:[#allocation8 + $0x130] sm:$0xff] }
  0x6b   :  { %3009 = vmatpush3.bf16.msra.mxu1 %v3795_v50  ;;  %2979 = vmatprep.subr.bf16.mxu0 %v3797_v53  ;;  %v3833_v18 = vpack.c.bf16 %v866_v16, %v865_v15  ;;  %v874_v15 = vld [vmem:[#allocation8 + $0x178] sm:$0xff] }
  0x6c   :  { %3011 = vmatprep.subr.bf16.mxu1 %v3799_v54  ;;  %v3882_v16 = vpack.c.bf16 %v874_v15, %v873_v14 }
  0x6d   :  { %4716 = vst [vmem:[#allocation24_spill] sm:$0xff] %v3833_v18 }
  0x6e   :  { %2981 = vmatpush3.bf16.msra.mxu0 %v3807_v61  ;;  %4732 = vst [vmem:[#allocation40_spill] sm:$0xff] %v3882_v16 }
  0x6f   :  { %3013 = vmatpush3.bf16.msra.mxu1 %v3809_v62  ;;  %2983 = vmatprep.subr.bf16.mxu0 %v3813_v1 }
  0x70   :  { %3015 = vmatprep.subr.bf16.mxu1 %v3815_v2 }
  0x72   :  { %2985 = vmatpush3.bf16.msra.mxu0 %v3819_v9 }
  0x73   :  { %3017 = vmatpush3.bf16.msra.mxu1 %v3821_v10  ;;  %2987 = vmatprep.subr.bf16.mxu0 %v3825_v12 }
  0x74   :  { %3019 = vmatprep.subr.bf16.mxu1 %v3827_v13  ;;  %v911_v13 = vld [vmem:[#allocation8 + $0x2a0] sm:$0xff] }
  0x76   :  { %2989 = vmatpush3.bf16.msra.mxu0 %v3831_v17  ;;  %v926_v17 = vld [vmem:[#allocation8 + $0x318] sm:$0xff] }
  0x77   :  { %3021 = vmatpush3.bf16.msra.mxu1 %v3833_v18  ;;  %2991 = vmatprep.subr.bf16.mxu0 %v3839_v22 }
  0x78   :  { %3023 = vmatprep.subr.bf16.mxu1 %v3841_v26 }
  0x7a   :  { %2993 = vmatpush3.bf16.msra.mxu0 %v3843_v27 }
  0x7b   :  { %3025 = vmatpush3.bf16.msra.mxu1 %v3846_v30  ;;  %2995 = vmatprep.subr.bf16.mxu0 %v3851_v34 }
  0x7c   :  { %3027 = vmatprep.subr.bf16.mxu1 %v3853_v38 }
  0x7e   :  { %2997 = vmatpush3.bf16.msra.mxu0 %v3855_v41 }
  0x7f   :  { %3029 = vmatpush3.bf16.msra.mxu1 %v3858_v44  ;;  %2999 = vmatprep.subr.bf16.mxu0 %v3863_v48 }
  0x80   :  { %3031 = vmatprep.subr.bf16.mxu1 %v3865_v56 }
  0x82   :  { %3001 = vmatpush3.bf16.msra.mxu0 %v3867_v57 }
  0x83   :  { %3033 = vmatpush3.bf16.msra.mxu1 %v3870_v60  ;;  %3003 = vmatprep.subr.bf16.mxu0 %v3875_v4  ;;  %v910_v4 = vld [vmem:[#allocation8 + $0x298] sm:$0xff] }
  0x84   :  { %3035 = vmatprep.subr.bf16.mxu1 %v3877_v8  ;;  %v4737_v8 = vsub.s32 7, %v3893_v29 }
  0x86   :  { %3005 = vmatpush3.bf16.msra.mxu0 %v3879_v11 }
  0x87   :  { %3037 = vmatpush3.bf16.msra.mxu1 %v3882_v16  ;;  %3039 = vmatprep.subr.bf16.mxu0 %v3887_v23 }
  0x88   :  { %3071 = vmatprep.subr.bf16.mxu1 %v3889_v25 }
 0x124   :  { %v292_v51 = vpop.f32.mrb[0].mxu0 }
 0x125   :  { %v333_v52 = vpop.f32.mrb[0].mxu1  ;;  %v293_v58 = vadd.f32 %v292_v51, %v88_v43  ;;  %v294_v63 = vpop.f32.mrb[1].mxu0  ;;  %v4615_v43 = vsub.s32 5, %v3893_v29 }
 0x126   :  { %v334_v59 = vadd.f32 %v333_v52, %v96_v45  ;;  %v335_v0 = vpop.f32.mrb[1].mxu1  ;;  %v295_v3 = vadd.f32 %v294_v63, %v92_v46  ;;  %v296_v6 = vpop.f32.mrb[2].mxu0 }
 0x127   :  { %v337_v7 = vpop.f32.mrb[2].mxu1  ;;  %v587_v14 = vsel %vm586_vm2, %v293_v58, 0.0  ;;  %v699_v15 = vmul.f32 %v293_v58, %v293_v58  ;;  %v297_v20 = vpop.f32.mrb[3].mxu0  ;;  %v336_v36 = vadd.f32 %v335_v0, %v100_v55  ;;  %v104_v55 = vrot.slane %v81_v33, %v4610_v24 }
 0x128   :  { %v701_v19 = vmul.f32 %v334_v59, %v334_v59  ;;  %v338_v21 = vpop.f32.mrb[3].mxu1  ;;  %v700_v28 = vmul.f32 %v295_v3, %v295_v3  ;;  %v601_v46 = vsel %vm586_vm2, %v334_v59, 0.0  ;;  %v2406_v51 = vpack.c.bf16 %v295_v3, %v293_v58 }
 0x129   :  { %v3915_v45 = vsel %vm586_vm2, %v699_v15, 0.0  ;;  %v588_v52 = vrot.slane %v587_v14, 4  ;;  %v594_v63 = vsel %vm586_vm2, %v295_v3, 0.0  ;;  %v602_v0 = vrot.slane %v601_v46, 4 }
 0x12a   :  { %4735 = vst [vmem:[#allocation43_spill] sm:$0xff] %v3915_v45  ;;  %v3919_v47 = vsel %vm586_vm2, %v701_v19, 0.0  ;;  %v3923_v6 = vsel %vm586_vm2, %v700_v28, 0.0  ;;  %v112_v15 = vrot.slane %v81_v33, %v4614_v37  ;;  %v108_v19 = vrot.slane %v81_v33, %v4615_v43 }
 0x12b   :  { %4736 = vst [vmem:[#allocation44_spill] sm:$0xff] %v3919_v47  ;;  %v595_v21 = vrot.slane %v594_v63, 4  ;;  %v3933_v3 = vrot.slane %v2406_v51, %v3908_v5  ;;  %v702_v28 = vmul.f32 %v336_v36, %v336_v36  ;;  %v2407_v42 = vpack.c.bf16 %v336_v36, %v334_v59  ;;  %v912_v47 = vld [vmem:[#allocation8 + $0x2a8] sm:$0xff] }
 0x12c   :  { %v374_v7 = vpop.f32.mrb[4].mxu0  ;;  %v589_v24 = vadd.f32 %v588_v52, %v587_v14  ;;  %v608_v16 = vsel %vm586_vm2, %v336_v36, 0.0  ;;  %v116_v14 = vrot.slane %v81_v33, %v4737_v8 }
 0x12d   :  { %v415_v20 = vpop.f32.mrb[4].mxu1  ;;  %v376_v32 = vpop.f32.mrb[5].mxu0  ;;  %v3937_v37 = vsel %vm586_vm2, %v702_v28, 0.0  ;;  %v3940_v43 = vrot.slane %v2407_v42, %v3908_v5  ;;  %v3942_v58 = vadd.f32 %v374_v7, %v104_v55  ;;  %v609_v42 = vrot.slane %v608_v16, 4  ;;  %v891_v7 = vld [vmem:[#allocation8 + $0x200] sm:$0xff]  ;;  %v909_v28 = vld [vmem:[#allocation8 + $0x290] sm:$0xff] }
 0x12e   :  { %v417_v35 = vpop.f32.mrb[5].mxu1  ;;  %v378_v31 = vpop.f32.mrb[6].mxu0  ;;  %v3944_v11 = vadd.f32 %v415_v20, %v112_v15  ;;  %v377_v59 = vadd.f32 %v376_v32, %v108_v19  ;;  %v590_v15 = vrot.slane %v589_v24, 2 }
 0x12f   :  { %v419_v25 = vpop.f32.mrb[6].mxu1  ;;  %v379_v23 = vpop.f32.mrb[7].mxu0  ;;  %v603_v31 = vadd.f32 %v602_v0, %v601_v46  ;;  %v703_v52 = vmul.f32 %v3942_v58, %v3942_v58  ;;  %v892_v46 = vld [vmem:[#allocation8 + $0x208] sm:$0xff]  ;;  %v610_v44 = vadd.f32 %v609_v42, %v608_v16  ;;  %v3982_v42 = vpack.c.bf16 %v910_v4, %v909_v28 }
 0x130   :  { %v420_v51 = vpop.f32.mrb[7].mxu1  ;;  %v596_v25 = vadd.f32 %v595_v21, %v594_v63  ;;  %v705_v55 = vmul.f32 %v3944_v11, %v3944_v11  ;;  %v622_v23 = vsel %vm586_vm2, %v377_v59, 0.0  ;;  %v704_v33 = vmul.f32 %v377_v59, %v377_v59  ;;  %v923_v63 = vld [vmem:[#allocation8 + $0x300] sm:$0xff]  ;;  %v924_v0 = vld [vmem:[#allocation8 + $0x308] sm:$0xff] }
 0x131   :  { %v3956_v32 = vsel %vm586_vm2, %v703_v52, 0.0  ;;  %v623_v8 = vrot.slane %v622_v23, 4  ;;  %v2408_v19 = vpack.c.bf16 %v377_v59, %v3942_v58  ;;  %v418_v21 = vadd.f32 %v417_v35, %v116_v14  ;;  %v3975_v35 = vld [vmem:[#allocation7 + $0x8] sm:$0xff] }
 0x132   :  { %4738 = vst [vmem:[#allocation45_spill] sm:$0xff] %v3956_v32  ;;  %v3959_v20 = vsel %vm586_vm2, %v705_v55, 0.0  ;;  %v604_v60 = vrot.slane %v603_v31, 2  ;;  %v3967_v52 = vsel %vm586_vm2, %v704_v33, 0.0  ;;  %v597_v32 = vrot.slane %v596_v25, 2 }
 0x133   :  { %4739 = vst [vmem:[#allocation46_spill] sm:$0xff] %v3959_v20  ;;  %4740 = vst [vmem:[#allocation47_spill] sm:$0xff] %v3967_v52  ;;  %v3971_v55 = vpack.c.bf16 %v892_v46, %v891_v7  ;;  %v3973_v20 = vpack.c.bf16 %v924_v0, %v923_v63  ;;  %v591_v48 = vadd.f32 %v590_v15, %v589_v24  ;;  %v636_v38 = vsel %vm586_vm2, %v418_v21, 0.0  ;;  %v941_v24 = vld [vmem:[#allocation8 + $0x390] sm:$0xff] }
 0x134   :  { %v3962_v51 = vpop.f32.mrb[8].mxu0  ;;  %v624_v41 = vadd.f32 %v623_v8, %v622_v23  ;;  %v706_v33 = vmul.f32 %v418_v21, %v418_v21  ;;  %v3979_v27 = vrot.slane %v2408_v19, %v3908_v5  ;;  %v637_v26 = vrot.slane %v636_v38, 4  ;;  %v942_v23 = vld [vmem:[#allocation8 + $0x398] sm:$0xff]  ;;  %v893_v19 = vld [vmem:[#allocation8 + $0x210] sm:$0xff] }
 0x135   :  { %v3964_v36 = vpop.f32.mrb[8].mxu1  ;;  %v458_v57 = vpop.f32.mrb[9].mxu0  ;;  %v2409_v16 = vpack.c.bf16 %v418_v21, %v3944_v11  ;;  %v605_v7 = vadd.f32 %v604_v60, %v603_v31  ;;  %v598_v63 = vadd.f32 %v597_v32, %v596_v25  ;;  %v4742_v15 = vsub.s32 0, %v3893_v29  ;;  %v894_v21 = vld [vmem:[#allocation8 + $0x218] sm:$0xff] }
 0x136   :  { %v3969_v56 = vpop.f32.mrb[9].mxu1  ;;  %v460_v59 = vpop.f32.mrb[10].mxu0  ;;  %v3985_v46 = vsel %vm586_vm2, %v706_v33, 0.0  ;;  %v611_v0 = vrot.slane %v610_v44, 2  ;;  %v4743_v4 = vsub.s32 1, %v3893_v29  ;;  %v592_v28 = vrot.slane %v591_v48, 1 }
 0x137   :  { %v501_v14 = vpop.f32.mrb[10].mxu1  ;;  %v461_v30 = vpop.f32.mrb[11].mxu0  ;;  %4741 = vst [vmem:[#allocation48_spill] sm:$0xff] %v3985_v46  ;;  %v3991_v8 = vrot.slane %v2409_v16, %v3908_v5  ;;  %v599_v31 = vrot.slane %v598_v63, 1  ;;  %v625_v25 = vrot.slane %v624_v41, 2  ;;  %v4744_v32 = vsub.s32 2, %v3893_v29 }
 0x138   :  { %v502_v34 = vpop.f32.mrb[11].mxu1  ;;  %v120_v30 = vrot.slane %v3975_v35, %v4742_v15  ;;  %v124_v60 = vrot.slane %v3975_v35, %v4743_v4  ;;  %v4001_v14 = vpack.c.bf16 %v942_v23, %v941_v24  ;;  %v925_v33 = vld [vmem:[#allocation8 + $0x310] sm:$0xff]  ;;  %v606_v22 = vrot.slane %v605_v7, 1 }
 0x139   :  { %v638_v34 = vadd.f32 %v637_v26, %v636_v38  ;;  %v128_v59 = vrot.slane %v3975_v35, %v4744_v32  ;;  %v612_v38 = vadd.f32 %v611_v0, %v610_v44  ;;  %v600_v4 = vadd.f32 %v599_v31, %v598_v63 }
 0x13a   :  { %v4007_v46 = vpack.c.bf16 %v894_v21, %v893_v19  ;;  %v626_v32 = vadd.f32 %v625_v25, %v624_v41  ;;  %v593_v24 = vadd.f32 %v592_v28, %v591_v48  ;;  %v4745_v0 = vsub.s32 3, %v3893_v29  ;;  %v943_v19 = vld [vmem:[#allocation8 + $0x3a0] sm:$0xff]  ;;  %v944_v21 = vld [vmem:[#allocation8 + $0x3a8] sm:$0xff] }
 0x13b   :  { %v639_v16 = vrot.slane %v638_v34, 2  ;;  %v613_v44 = vrot.slane %v612_v38, 1  ;;  %1147 = vmatprep.mubr.f32.mxu0 %v600_v4  ;;  %v457_v45 = vadd.f32 %v3962_v51, %v120_v30  ;;  %v459_v41 = vadd.f32 %v458_v57, %v124_v60  ;;  %v927_v4 = vld [vmem:[#allocation8 + $0x320] sm:$0xff]  ;;  %v928_v51 = vld [vmem:[#allocation8 + $0x328] sm:$0xff]  ;;  %v913_v57 = vld [vmem:[#allocation8 + $0x2b0] sm:$0xff] }
 0x13c   :  { %v4003_v15 = vpop.f32.mrb[12].mxu0  ;;  %v132_v52 = vrot.slane %v3975_v35, %v4745_v0  ;;  %v627_v31 = vrot.slane %v626_v32, 1  ;;  %v4018_v25 = vadd.f32 %v3964_v36, %v128_v59  ;;  %1148 = vmatmul.mubr.f32.vlgmr.msra.gmra.mrb[16].mxu0 %v593_v24  ;;  %v4022_v28 = vpack.c.bf16 %v912_v47, %v911_v13  ;;  %v914_v30 = vld [vmem:[#allocation8 + $0x2b8] sm:$0xff]  ;;  %v945_v13 = vld [vmem:[#allocation8 + $0x3b0] sm:$0xff] }
 0x13d   :  { %v4005_v18 = vpop.f32.mrb[12].mxu1  ;;  %v4009_v10 = vpop.f32.mrb[13].mxu0  ;;  %v640_v23 = vadd.f32 %v639_v16, %v638_v34  ;;  %v614_v48 = vadd.f32 %v613_v44, %v612_v38  ;;  %v4020_v34 = vpack.c.bf16 %v926_v17, %v925_v33  ;;  %v896_v16 = vld [vmem:[#allocation8 + $0x228] sm:$0xff]  ;;  %3041 = vmatpush3.bf16.msra.mxu0 %v3971_v55  ;;  %v946_v17 = vld [vmem:[#allocation8 + $0x3b8] sm:$0xff]  ;;  %v897_v47 = vld [vmem:[#allocation8 + $0x230] sm:$0xff]  ;;  %v708_v59 = vmul.f32 %v459_v41, %v459_v41 }
 0x13e   :  { %v4011_v26 = vpop.f32.mrb[13].mxu1  ;;  %v542_v12 = vpop.f32.mrb[14].mxu0  ;;  %v628_v36 = vadd.f32 %v627_v31, %v626_v32  ;;  %3043 = vmatprep.subr.bf16.mxu0 %v3982_v42  ;;  %v929_v38 = vld [vmem:[#allocation8 + $0x330] sm:$0xff]  ;;  %v930_v33 = vld [vmem:[#allocation8 + $0x338] sm:$0xff]  ;;  %v2410_v44 = vpack.c.bf16 %v459_v41, %v457_v45  ;;  %v4035_v24 = vsel %vm586_vm2, %v4018_v25, 0.0  ;;  %v709_v31 = vmul.f32 %v4018_v25, %v4018_v25 }
 0x13f   :  { %v583_v63 = vpop.f32.mrb[14].mxu1  ;;  %v543_v9 = vpop.f32.mrb[15].mxu0  ;;  %v895_v12 = vld [vmem:[#allocation8 + $0x220] sm:$0xff]  ;;  %v641_v0 = vrot.slane %v640_v23, 1  ;;  %1217 = vmatprep.mubr.f32.mxu1 %v614_v48  ;;  %v4045_v48 = vsel %vm586_vm2, %v708_v59, 0.0 }
 0x140   :  { %v584_v2 = vpop.f32.mrb[15].mxu1  ;;  %v607_v63 = vadd.f32 %v606_v22, %v605_v7  ;;  %v4026_v9 = vsel %vm586_vm2, %v457_v45, 0.0  ;;  %v500_v22 = vadd.f32 %v3969_v56, %v132_v52  ;;  %v898_v7 = vld [vmem:[#allocation8 + $0x238] sm:$0xff]  ;;  %1287 = vmatprep.mubr.f32.mxu0 %v628_v36  ;;  %v4042_v56 = vpack.c.bf16 %v896_v16, %v895_v12  ;;  %v915_v52 = vld [vmem:[#allocation8 + $0x2c0] sm:$0xff]  ;;  %4748 = vst [vmem:[#allocation51_spill] sm:$0xff] %v4045_v48  ;;  %v948_v16 = vld [vmem:[#allocation8 + $0x3c8] sm:$0xff] }
 0x141   :  { %v707_v2 = vmul.f32 %v457_v45, %v457_v45  ;;  %v642_v60 = vadd.f32 %v641_v0, %v640_v23  ;;  %v4040_v23 = vpack.c.bf16 %v944_v21, %v943_v19  ;;  %v4749_v45 = vsub.s32 4, %v3893_v29  ;;  %3045 = vmatpush3.bf16.msra.mxu0 %v4007_v46  ;;  %v916_v21 = vld [vmem:[#allocation8 + $0x2c8] sm:$0xff]  ;;  %v947_v12 = vld [vmem:[#allocation8 + $0x3c0] sm:$0xff] }
 0x142   :  { %1218 = vmatmul.mubr.f32.vlgmr.msra.gmra.mrb[16].mxu1 %v607_v63  ;;  %4747 = vst [vmem:[#allocation50_spill] sm:$0xff] %v4042_v56  ;;  %v4052_v63 = vpack.c.bf16 %v928_v51, %v927_v4  ;;  %v4054_v36 = vpack.c.bf16 %v914_v30, %v913_v57  ;;  %v4056_v19 = vpack.c.bf16 %v946_v17, %v945_v13  ;;  %v4756_v4 = vsub.s32 6, %v3893_v29 }
 0x143   :  { %v4031_v32 = vsel %vm586_vm2, %v707_v2, 0.0  ;;  %3073 = vmatpush3.bf16.msra.mxu1 %v3973_v20  ;;  %1357 = vmatprep.mubr.f32.mxu1 %v642_v60  ;;  %v136_v0 = vrot.slane %v3975_v35, %v4749_v45  ;;  %v4059_v2 = vsel %vm586_vm2, %v709_v31, 0.0  ;;  %v615_v60 = vsel %vm586_vm2, %v3942_v58, 0.0 }
 0x144   :  { %4746 = vst [vmem:[#allocation49_spill] sm:$0xff] %v4031_v32  ;;  %3075 = vmatprep.subr.bf16.mxu1 %v4001_v14  ;;  %4750 = vst [vmem:[#allocation52_spill] sm:$0xff] %v4052_v63  ;;  %3047 = vmatprep.subr.bf16.mxu0 %v4022_v28  ;;  %v4064_v59 = vpack.c.bf16 %v898_v7, %v897_v47  ;;  %v4066_v45 = vpack.c.bf16 %v930_v33, %v929_v38  ;;  %v650_v57 = vsel %vm586_vm2, %v459_v41, 0.0  ;;  %v899_v7 = vld [vmem:[#allocation8 + $0x240] sm:$0xff]  ;;  %v900_v38 = vld [vmem:[#allocation8 + $0x248] sm:$0xff] }
 0x145   :  { %4751 = vst [vmem:[#allocation53_spill] sm:$0xff] %v4054_v36  ;;  %4752 = vst [vmem:[#allocation54_spill] sm:$0xff] %v4056_v19  ;;  %v144_v51 = vrot.slane %v3975_v35, %v4756_v4  ;;  %v4073_v30 = vrot.slane %v2410_v44, %v3908_v5  ;;  %v710_v13 = vmul.f32 %v500_v22, %v500_v22  ;;  %v4759_v31 = vsub.s32 5, %v3893_v29  ;;  %v918_v4 = vld [vmem:[#allocation8 + $0x2d8] sm:$0xff]  ;;  %v931_v32 = vld [vmem:[#allocation8 + $0x340] sm:$0xff] }
 0x146   :  { %4753 = vst [vmem:[#allocation55_spill] sm:$0xff] %v4059_v2  ;;  %4754 = vst [vmem:[#allocation56_spill] sm:$0xff] %v4064_v59  ;;  %v2411_v17 = vpack.c.bf16 %v500_v22, %v4018_v25  ;;  %v4077_v58 = vpack.c.bf16 %v916_v21, %v915_v52  ;;  %v4079_v47 = vpack.c.bf16 %v948_v16, %v947_v12  ;;  %v616_v44 = vrot.slane %v615_v60, 4  ;;  %v917_v25 = vld [vmem:[#allocation8 + $0x2d0] sm:$0xff] }
 0x147   :  { %4755 = vst [vmem:[#allocation57_spill] sm:$0xff] %v4066_v45  ;;  %3077 = vmatpush3.bf16.msra.mxu1 %v4020_v34  ;;  %v4082_v33 = vadd.f32 %v4003_v15, %v136_v0  ;;  %v140_v41 = vrot.slane %v3975_v35, %v4759_v31  ;;  %3049 = vmatpush3.bf16.msra.mxu0 %v4042_v56  ;;  %v664_v52 = vsel %vm586_vm2, %v500_v22, 0.0  ;;  %v4091_v21 = vsel %vm586_vm2, %v710_v13, 0.0 }
 0x148   :  { %4757 = vst [vmem:[#allocation58_spill] sm:$0xff] %v4077_v58  ;;  %4758 = vst [vmem:[#allocation59_spill] sm:$0xff] %v4079_v47  ;;  %3079 = vmatprep.subr.bf16.mxu1 %v4040_v23  ;;  %v4094_v12 = vrot.slane %v2411_v17, %v3908_v5  ;;  %v629_v15 = vsel %vm586_vm2, %v3944_v11, 0.0  ;;  %3051 = vmatprep.subr.bf16.mxu0 %v4054_v36  ;;  %v651_v0 = vrot.slane %v650_v57, 4  ;;  %v4762_v11 = vsub.s32 7, %v3893_v29  ;;  %v950_v29 = vld [vmem:[#allocation8 + $0x3d8] sm:$0xff] }
 0x149   :  { %4760 = vst [vmem:[#allocation60_spill] sm:$0xff] %v4091_v21  ;;  %v4101_v16 = vsel %vm586_vm2, %v4082_v33, 0.0  ;;  %v711_v31 = vmul.f32 %v4082_v33, %v4082_v33  ;;  %v4105_v22 = vpack.c.bf16 %v900_v38, %v899_v7  ;;  %v4110_v17 = vadd.f32 %v4005_v18, %v144_v51  ;;  %v932_v21 = vld [vmem:[#allocation8 + $0x348] sm:$0xff]  ;;  %v949_v18 = vld [vmem:[#allocation8 + $0x3d0] sm:$0xff] }
 0x14a   :  { %v148_v2 = vrot.slane %v3975_v35, %v4762_v11  ;;  %v4116_v48 = vpack.c.bf16 %v918_v4, %v917_v25  ;;  %v665_v36 = vrot.slane %v664_v52, 4  ;;  %v541_v38 = vadd.f32 %v4009_v10, %v140_v41  ;;  %v901_v35 = vld [vmem:[#allocation8 + $0x250] sm:$0xff]  ;;  %v902_v4 = vld [vmem:[#allocation8 + $0x258] sm:$0xff]  ;;  %v919_v10 = vld [vmem:[#allocation8 + $0x2e0] sm:$0xff] }
 0x14b   :  { %4761 = vst [vmem:[#allocation61_spill] sm:$0xff] %v4105_v22  ;;  %3081 = vmatpush3.bf16.msra.mxu1 %v4052_v63  ;;  %v4119_v7 = vsel %vm586_vm2, %v711_v31, 0.0  ;;  %v617_v13 = vadd.f32 %v616_v44, %v615_v60  ;;  %v630_v56 = vrot.slane %v629_v15, 4  ;;  %3053 = vmatpush3.bf16.msra.mxu0 %v4064_v59  ;;  %v4126_v51 = vsel %vm586_vm2, %v4110_v17, 0.0  ;;  %v920_v60 = vld [vmem:[#allocation8 + $0x2e8] sm:$0xff] }
 0x14c   :  { %4763 = vst [vmem:[#allocation62_spill] sm:$0xff] %v4116_v48  ;;  %4764 = vst [vmem:[#allocation63_spill] sm:$0xff] %v4119_v7  ;;  %3083 = vmatprep.subr.bf16.mxu1 %v4056_v19  ;;  %v713_v25 = vmul.f32 %v4110_v17, %v4110_v17  ;;  %3055 = vmatprep.subr.bf16.mxu0 %v4077_v58  ;;  %v652_v41 = vadd.f32 %v651_v0, %v650_v57  ;;  %v4132_v44 = vsel %vm586_vm2, %v541_v38, 0.0 }
 0x14d   :  { %v712_v31 = vmul.f32 %v541_v38, %v541_v38  ;;  %v2412_v11 = vpack.c.bf16 %v541_v38, %v4082_v33  ;;  %v582_v59 = vadd.f32 %v4011_v26, %v148_v2  ;;  %v4140_v19 = vpack.c.bf16 %v932_v21, %v931_v32  ;;  %v933_v38 = vld [vmem:[#allocation8 + $0x350] sm:$0xff]  ;;  %v951_v2 = vld [vmem:[#allocation8 + $0x3e0] sm:$0xff]  ;;  %v952_v21 = vld [vmem:[#allocation8 + $0x3e8] sm:$0xff] }
 0x14e   :  { %v4136_v7 = vsel %vm586_vm2, %v713_v25, 0.0  ;;  %v4142_v58 = vpack.c.bf16 %v950_v29, %v949_v18  ;;  %v666_v63 = vadd.f32 %v665_v36, %v664_v52  ;;  %v631_v0 = vadd.f32 %v630_v56, %v629_v15  ;;  %v934_v25 = vld [vmem:[#allocation8 + $0x358] sm:$0xff]  ;;  %v903_v36 = vld [vmem:[#allocation8 + $0x260] sm:$0xff]  ;;  %v904_v52 = vld [vmem:[#allocation8 + $0x268] sm:$0xff] }
 0x14f   :  { %4765 = vst [vmem:[#allocation64_spill] sm:$0xff] %v4136_v7  ;;  %3085 = vmatpush3.bf16.msra.mxu1 %v4066_v45  ;;  %4766 = vst [vmem:[#allocation65_spill] sm:$0xff] %v4140_v19  ;;  %v4145_v57 = vsel %vm586_vm2, %v712_v31, 0.0  ;;  %3057 = vmatpush3.bf16.msra.mxu0 %v4105_v22  ;;  %v4149_v33 = vpack.c.bf16 %v902_v4, %v901_v35  ;;  %v4151_v26 = vpack.c.bf16 %v920_v60, %v919_v10  ;;  %v921_v29 = vld [vmem:[#allocation8 + $0x2f0] sm:$0xff]  ;;  %v922_v31 = vld [vmem:[#allocation8 + $0x2f8] sm:$0xff] }
 0x150   :  { %4767 = vst [vmem:[#allocation66_spill] sm:$0xff] %v4142_v58  ;;  %4768 = vst [vmem:[#allocation67_spill] sm:$0xff] %v4145_v57  ;;  %3087 = vmatprep.subr.bf16.mxu1 %v4079_v47  ;;  %v618_v32 = vrot.slane %v617_v13, 2  ;;  %3059 = vmatprep.subr.bf16.mxu0 %v4116_v48  ;;  %v4155_v18 = vsel %vm586_vm2, %v582_v59, 0.0  ;;  %v714_v56 = vmul.f32 %v582_v59, %v582_v59  ;;  %v653_v15 = vrot.slane %v652_v41, 2  ;;  %v936_v47 = vld [vmem:[#allocation8 + $0x368] sm:$0xff] }
 0x151   :  { %4769 = vst [vmem:[#allocation68_spill] sm:$0xff] %v4149_v33  ;;  %4770 = vst [vmem:[#allocation69_spill] sm:$0xff] %v4151_v26  ;;  %v4158_v35 = vrot.slane %v2412_v11, %v3908_v5  ;;  %v2413_v4 = vpack.c.bf16 %v582_v59, %v4110_v17  ;;  %v4162_v10 = vpack.c.bf16 %v934_v25, %v933_v38  ;;  %v667_v7 = vrot.slane %v666_v63, 2  ;;  %v935_v11 = vld [vmem:[#allocation8 + $0x360] sm:$0xff]  ;;  %v953_v59 = vld [vmem:[#allocation8 + $0x3f0] sm:$0xff] }
 0x152   :  { %v4165_v60 = vsel %vm586_vm2, %v714_v56, 0.0  ;;  %v632_v57 = vrot.slane %v631_v0, 2  ;;  %v4169_v48 = vpack.c.bf16 %v952_v21, %v951_v2  ;;  %v4171_v22 = vpack.c.bf16 %v904_v52, %v903_v36  ;;  %v954_v56 = vld [vmem:[#allocation8 + $0x3f8] sm:$0xff]  ;;  %v972_v2 = vld [vmem:[#allocation8 + $0x488] sm:$0xff] }
 0x153   :  { %3089 = vmatpush3.bf16.msra.mxu1 %v4140_v19  ;;  %4771 = vst [vmem:[#allocation70_spill] sm:$0xff] %v4162_v10  ;;  %4772 = vst [vmem:[#allocation71_spill] sm:$0xff] %v4165_v60  ;;  %3061 = vmatpush3.bf16.msra.mxu0 %v4149_v33  ;;  %v4174_v17 = vrot.slane %v2413_v4, %v3908_v5  ;;  %v619_v38 = vadd.f32 %v618_v32, %v617_v13  ;;  %v905_v60 = vld [vmem:[#allocation8 + $0x270] sm:$0xff]  ;;  %v971_v33 = vld [vmem:[#allocation8 + $0x480] sm:$0xff] }
 0x154   :  { %3091 = vmatprep.subr.bf16.mxu1 %v4142_v58  ;;  %4773 = vst [vmem:[#allocation72_spill] sm:$0xff] %v4169_v48  ;;  %4774 = vst [vmem:[#allocation73_spill] sm:$0xff] %v4171_v22  ;;  %3063 = vmatprep.subr.bf16.mxu0 %v4151_v26  ;;  %v4177_v25 = vpack.c.bf16 %v922_v31, %v921_v29  ;;  %v906_v58 = vld [vmem:[#allocation8 + $0x278] sm:$0xff]  ;;  %v654_v19 = vadd.f32 %v653_v15, %v652_v41  ;;  %v937_v41 = vld [vmem:[#allocation8 + $0x370] sm:$0xff] }
 0x155   :  { %v4182_v36 = vpack.c.bf16 %v936_v47, %v935_v11  ;;  %v668_v52 = vadd.f32 %v667_v7, %v666_v63  ;;  %v633_v4 = vadd.f32 %v632_v57, %v631_v0  ;;  %v4186_v13 = vpack.c.bf16 %v954_v56, %v953_v59  ;;  %v938_v15 = vld [vmem:[#allocation8 + $0x378] sm:$0xff]  ;;  %v1003_v29 = vld [vmem:[#allocation8 + $0x580] sm:$0xff]  ;;  %v1004_v47 = vld [vmem:[#allocation8 + $0x588] sm:$0xff] }
 0x156   :  { %4775 = vst [vmem:[#allocation74_spill] sm:$0xff] %v4177_v25  ;;  %v4188_v32 = vpack.c.bf16 %v906_v58, %v905_v60  ;;  %v620_v31 = vrot.slane %v619_v38, 1  ;;  %v4191_v21 = vpack.c.bf16 %v972_v2, %v971_v33  ;;  %v955_v11 = vld [vmem:[#allocation8 + $0x400] sm:$0xff]  ;;  %v956_v63 = vld [vmem:[#allocation8 + $0x408] sm:$0xff]  ;;  %v655_v7 = vrot.slane %v654_v19, 1  ;;  %v973_v57 = vld [vmem:[#allocation8 + $0x490] sm:$0xff] }
 0x157   :  { %3093 = vmatpush3.bf16.msra.mxu1 %v4162_v10  ;;  %4776 = vst [vmem:[#allocation75_spill] sm:$0xff] %v4182_v36  ;;  %3065 = vmatpush3.bf16.msra.mxu0 %v4171_v22  ;;  %4777 = vst [vmem:[#allocation76_spill] sm:$0xff] %v4186_v13  ;;  %v974_v0 = vld [vmem:[#allocation8 + $0x498] sm:$0xff]  ;;  %v4194_v59 = vpack.c.bf16 %v938_v15, %v937_v41  ;;  %v669_v58 = vrot.slane %v668_v52, 1  ;;  %v634_v60 = vrot.slane %v633_v4, 1  ;;  %v987_v2 = vld [vmem:[#allocation8 + $0x500] sm:$0xff] }
 0x158   :  { %3095 = vmatprep.subr.bf16.mxu1 %v4169_v48  ;;  %3067 = vmatprep.subr.bf16.mxu0 %v4177_v25  ;;  %v4198_v56 = vpack.c.bf16 %v1004_v47, %v1003_v29  ;;  %v4200_v33 = vpack.c.bf16 %v956_v63, %v955_v11  ;;  %v988_v25 = vld [vmem:[#allocation8 + $0x508] sm:$0xff]  ;;  %v1005_v22 = vld [vmem:[#allocation8 + $0x590] sm:$0xff]  ;;  %v621_v48 = vadd.f32 %v620_v31, %v619_v38  ;;  %v1006_v41 = vld [vmem:[#allocation8 + $0x598] sm:$0xff] }
 0x159   :  { %v4203_v10 = vpack.c.bf16 %v974_v0, %v973_v57  ;;  %v957_v15 = vld [vmem:[#allocation8 + $0x410] sm:$0xff]  ;;  %v656_v26 = vadd.f32 %v655_v7, %v654_v19  ;;  %v976_v45 = vld [vmem:[#allocation8 + $0x4a8] sm:$0xff]  ;;  %v4206_v29 = vpack.c.bf16 %v988_v25, %v987_v2  ;;  %v670_v47 = vadd.f32 %v669_v58, %v668_v52  ;;  %v990_v57 = vld [vmem:[#allocation8 + $0x518] sm:$0xff] }
 0x15a   :  { %v635_v11 = vadd.f32 %v634_v60, %v633_v4  ;;  %v4210_v38 = vpack.c.bf16 %v1006_v41, %v1005_v22  ;;  %v989_v63 = vld [vmem:[#allocation8 + $0x510] sm:$0xff]  ;;  %v1007_v19 = vld [vmem:[#allocation8 + $0x5a0] sm:$0xff]  ;;  %v960_v0 = vld [vmem:[#allocation8 + $0x428] sm:$0xff] }
 0x15b   :  { %3097 = vmatpush3.bf16.msra.mxu1 %v4182_v36  ;;  %3069 = vmatpush3.bf16.msra.mxu0 %v4188_v32  ;;  %v958_v36 = vld [vmem:[#allocation8 + $0x418] sm:$0xff]  ;;  %v959_v25 = vld [vmem:[#allocation8 + $0x420] sm:$0xff]  ;;  %v977_v52 = vld [vmem:[#allocation8 + $0x4b0] sm:$0xff]  ;;  %v4218_v22 = vpack.c.bf16 %v990_v57, %v989_v63 }
 0x15c   :  { %3099 = vmatprep.subr.bf16.mxu1 %v4186_v13  ;;  %3103 = vmatprep.subr.bf16.mxu0 %v4191_v21  ;;  %v975_v13 = vld [vmem:[#allocation8 + $0x4a0] sm:$0xff]  ;;  %4778 = vst [vmem:[#allocation77_spill] sm:$0xff] %v4210_v38  ;;  %v4212_v31 = vpack.c.bf16 %v958_v36, %v957_v15  ;;  %v978_v4 = vld [vmem:[#allocation8 + $0x4b8] sm:$0xff]  ;;  %v992_v58 = vld [vmem:[#allocation8 + $0x528] sm:$0xff] }
 0x15d   :  { %v4215_v7 = vpack.c.bf16 %v976_v45, %v975_v13  ;;  %4781 = vst [vmem:[#allocation80_spill] sm:$0xff] %v4218_v22  ;;  %v4224_v45 = vpack.c.bf16 %v960_v0, %v959_v25  ;;  %v991_v13 = vld [vmem:[#allocation8 + $0x520] sm:$0xff]  ;;  %v1009_v60 = vld [vmem:[#allocation8 + $0x5b0] sm:$0xff]  ;;  %v1010_v2 = vld [vmem:[#allocation8 + $0x5b8] sm:$0xff] }
 0x15e   :  { %1288 = vmatmul.mubr.f32.vlgmr.msra.gmra.mrb[18].mxu0 %v621_v48  ;;  %4779 = vst [vmem:[#allocation78_spill] sm:$0xff] %v4212_v31  ;;  %v1008_v48 = vld [vmem:[#allocation8 + $0x5a8] sm:$0xff]  ;;  %v961_v41 = vld [vmem:[#allocation8 + $0x430] sm:$0xff]  ;;  %v962_v15 = vld [vmem:[#allocation8 + $0x438] sm:$0xff]  ;;  %v4230_v63 = vpack.c.bf16 %v992_v58, %v991_v13 }
 0x15f   :  { %3101 = vmatpush3.bf16.msra.mxu1 %v4194_v59  ;;  %3105 = vmatpush3.bf16.msra.mxu0 %v4200_v33  ;;  %4780 = vst [vmem:[#allocation79_spill] sm:$0xff] %v4215_v7  ;;  %v4222_v36 = vpack.c.bf16 %v1008_v48, %v1007_v19  ;;  %4783 = vst [vmem:[#allocation82_spill] sm:$0xff] %v4224_v45  ;;  %v993_v57 = vld [vmem:[#allocation8 + $0x530] sm:$0xff]  ;;  %v4234_v19 = vpack.c.bf16 %v1010_v2, %v1009_v60  ;;  %v994_v25 = vld [vmem:[#allocation8 + $0x538] sm:$0xff] }
 0x160   :  { %3135 = vmatprep.subr.bf16.mxu1 %v4198_v56  ;;  %3107 = vmatprep.subr.bf16.mxu0 %v4203_v10  ;;  %v4236_v48 = vpack.c.bf16 %v962_v15, %v961_v41  ;;  %v1011_v0 = vld [vmem:[#allocation8 + $0x5c0] sm:$0xff]  ;;  %v4785_v60 = vcombine.low %v3933_v3, %v3940_v43  ;;  %v4786_v41 = vcombine.low %v3979_v27, %v3991_v8  ;;  %v693_v43 = vrot.slane %v4155_v18, 4 }
 0x161   :  { %1427 = vmatprep.mubr.f32.mxu0 %v656_v26  ;;  %4782 = vst [vmem:[#allocation81_spill] sm:$0xff] %v4222_v36  ;;  %v4227_v26 = vpack.c.bf16 %v978_v4, %v977_v52  ;;  %v1012_v52 = vld [vmem:[#allocation8 + $0x5c8] sm:$0xff]  ;;  %v644_v4 = vrot.slane %v4026_v9, 4  ;;  %v963_v58 = vld [vmem:[#allocation8 + $0x440] sm:$0xff]  ;;  %v658_v27 = vrot.slane %v4035_v24, 4 }
 0x162   :  { %1358 = vmatmul.mubr.f32.vlgmr.msra.gmra.mrb[18].mxu1 %v635_v11  ;;  %v979_v11 = vld [vmem:[#allocation8 + $0x4c0] sm:$0xff]  ;;  %v2281_v2 = vrot.slane %v4785_v60, %v3908_v5  ;;  %v2288_v15 = vrot.slane %v4786_v41, %v3908_v5  ;;  %v4263_v3 = vpack.c.bf16 %v1012_v52, %v1011_v0  ;;  %v1014_v0 = vld [vmem:[#allocation8 + $0x5d8] sm:$0xff]  ;;  %v965_v52 = vld [vmem:[#allocation8 + $0x450] sm:$0xff] }
 0x163   :  { %3137 = vmatpush3.bf16.msra.mxu1 %v4206_v29  ;;  %1497 = vmatprep.mubr.f32.mxu1 %v670_v47  ;;  %4784 = vst [vmem:[#allocation83_spill] sm:$0xff] %v4227_v26  ;;  %v980_v47 = vld [vmem:[#allocation8 + $0x4c8] sm:$0xff]  ;;  %v966_v60 = vld [vmem:[#allocation8 + $0x458] sm:$0xff]  ;;  %v983_v41 = vld [vmem:[#allocation8 + $0x4e0] sm:$0xff] }
 0x164   :  { %3139 = vmatprep.subr.bf16.mxu1 %v4210_v38  ;;  %3109 = vmatpush3.bf16.msra.mxu0 %v4212_v31  ;;  %v4241_v13 = vpack.c.bf16 %v980_v47, %v979_v11  ;;  %v982_v31 = vld [vmem:[#allocation8 + $0x4d8] sm:$0xff]  ;;  %v4788_v47 = vcombine.low %v4158_v35, %v4174_v17  ;;  %v4260_v38 = vpack.c.bf16 %v994_v25, %v993_v57  ;;  %v1013_v35 = vld [vmem:[#allocation8 + $0x5d0] sm:$0xff] }
 0x165   :  { %3111 = vmatprep.subr.bf16.mxu0 %v4215_v7  ;;  %v964_v7 = vld [vmem:[#allocation8 + $0x448] sm:$0xff] }
 0x166   :  { %v4268_v8 = vpack.c.bf16 %v964_v7, %v963_v58  ;;  %v694_v7 = vadd.f32 %v693_v43, %v4155_v18  ;;  %v1016_v18 = vld [vmem:[#allocation8 + $0x5e8] sm:$0xff]  ;;  %v985_v43 = vld [vmem:[#allocation8 + $0x4f0] sm:$0xff] }
 0x167   :  { %3141 = vmatpush3.bf16.msra.mxu1 %v4218_v22  ;;  %v679_v22 = vrot.slane %v4132_v44, 4 }
 0x168   :  { %3143 = vmatprep.subr.bf16.mxu1 %v4222_v36  ;;  %3113 = vmatpush3.bf16.msra.mxu0 %v4224_v45  ;;  %v981_v36 = vld [vmem:[#allocation8 + $0x4d0] sm:$0xff]  ;;  %v2337_v45 = vrot.slane %v4788_v47, %v3908_v5  ;;  %4789 = vst [vmem:[#allocation84_spill] sm:$0xff] %v4268_v8  ;;  %v984_v47 = vld [vmem:[#allocation8 + $0x4e8] sm:$0xff] }
 0x169   :  { %3115 = vmatprep.subr.bf16.mxu0 %v4227_v26  ;;  %v4787_v26 = vcombine.low %v4073_v30, %v4094_v12  ;;  %v995_v30 = vld [vmem:[#allocation8 + $0x540] sm:$0xff]  ;;  %v996_v12 = vld [vmem:[#allocation8 + $0x548] sm:$0xff]  ;;  %v680_v57 = vadd.f32 %v679_v22, %v4132_v44  ;;  %v4273_v25 = vpack.c.bf16 %v982_v31, %v981_v36  ;;  %v4282_v44 = vpack.c.bf16 %v1014_v0, %v1013_v35  ;;  %v997_v22 = vld [vmem:[#allocation8 + $0x550] sm:$0xff] }
 0x16a   :  { %v4284_v31 = vpack.c.bf16 %v966_v60, %v965_v52  ;;  %v998_v36 = vld [vmem:[#allocation8 + $0x558] sm:$0xff]  ;;  %v999_v0 = vld [vmem:[#allocation8 + $0x560] sm:$0xff]  ;;  %v1000_v52 = vld [vmem:[#allocation8 + $0x568] sm:$0xff] }
 0x16b   :  { %v2330_v11 = vrot.slane %v4787_v26, %v3908_v5  ;;  %3145 = vmatpush3.bf16.msra.mxu1 %v4230_v63  ;;  %v2289_v5 = vcombine.low %v2281_v2, %v2288_v15  ;;  %v645_v26 = vadd.f32 %v644_v4, %v4026_v9  ;;  %4790 = vst [vmem:[#allocation85_spill] sm:$0xff] %v4273_v25  ;;  %4792 = vst [vmem:[#allocation87_spill] sm:$0xff] %v4282_v44  ;;  %v1015_v4 = vld [vmem:[#allocation8 + $0x5e0] sm:$0xff]  ;;  %v1017_v60 = vld [vmem:[#allocation8 + $0x5f0] sm:$0xff] }
 0x16c   :  { %3147 = vmatprep.subr.bf16.mxu1 %v4234_v19  ;;  %3117 = vmatpush3.bf16.msra.mxu0 %v4236_v48  ;;  %v659_v9 = vadd.f32 %v658_v27, %v4035_v24  ;;  %4793 = vst [vmem:[#allocation88_spill] sm:$0xff] %v4284_v31  ;;  %v4287_v2 = vpack.c.bf16 %v984_v47, %v983_v41  ;;  %v967_v15 = vld [vmem:[#allocation8 + $0x460] sm:$0xff]  ;;  %v681_v24 = vrot.slane %v680_v57, 2  ;;  %v986_v27 = vld [vmem:[#allocation8 + $0x4f8] sm:$0xff] }
 0x16d   :  { %v2338_v17 = vcombine.low %v2330_v11, %v2337_v45  ;;  %3119 = vmatprep.subr.bf16.mxu0 %v4241_v13  ;;  %2341 = vst [vmem:[#allocation10] sm:$0xff] %v2289_v5  ;;  %v4277_v45 = vpack.c.bf16 %v996_v12, %v995_v30  ;;  %v646_v58 = vrot.slane %v645_v26, 2  ;;  %v968_v11 = vld [vmem:[#allocation8 + $0x468] sm:$0xff]  ;;  %v4290_v30 = vpack.c.bf16 %v998_v36, %v997_v22  ;;  %v1018_v22 = vld [vmem:[#allocation8 + $0x5f8] sm:$0xff]  ;;  %v969_v36 = vld [vmem:[#allocation8 + $0x470] sm:$0xff] }
 0x16e   :  { %4794 = vst [vmem:[#allocation89_spill] sm:$0xff] %v4287_v2  ;;  %v695_v12 = vrot.slane %v694_v7, 2  ;;  %v660_v35 = vrot.slane %v659_v9, 2  ;;  %v4294_v5 = vpack.c.bf16 %v1016_v18, %v1015_v4  ;;  %v4299_v47 = vpack.c.bf16 %v986_v27, %v985_v43  ;;  %v1002_v43 = vld [vmem:[#allocation8 + $0x578] sm:$0xff]  ;;  %v1067_v27 = vld [vmem:[#allocation8 + $0x780] sm:$0xff] }
 0x16f   :  { %2342 = vst [vmem:[#allocation10 + $0x8] sm:$0xff] %v2338_v17  ;;  %3149 = vmatpush3.bf16.msra.mxu1 %v4260_v38  ;;  %4791 = vst [vmem:[#allocation86_spill] sm:$0xff] %v4277_v45  ;;  %v4296_v17 = vpack.c.bf16 %v968_v11, %v967_v15  ;;  %v647_v41 = vadd.f32 %v646_v58, %v645_v26  ;;  %v4302_v4 = vpack.c.bf16 %v1000_v52, %v999_v0  ;;  %v1001_v11 = vld [vmem:[#allocation8 + $0x570] sm:$0xff]  ;;  %v1068_v0 = vld [vmem:[#allocation8 + $0x788] sm:$0xff] }
 0x170   :  { %3151 = vmatprep.subr.bf16.mxu1 %v4263_v3  ;;  %3121 = vmatpush3.bf16.msra.mxu0 %v4268_v8  ;;  %4795 = vst [vmem:[#allocation90_spill] sm:$0xff] %v4290_v30  ;;  %4796 = vst [vmem:[#allocation91_spill] sm:$0xff] %v4294_v5  ;;  %v1035_v8 = vld [vmem:[#allocation8 + $0x680] sm:$0xff]  ;;  %v696_v18 = vadd.f32 %v695_v12, %v694_v7  ;;  %v661_v15 = vadd.f32 %v660_v35, %v659_v9  ;;  %v1020_v7 = vld [vmem:[#allocation8 + $0x608] sm:$0xff] }
 0x171   :  { %3123 = vmatprep.subr.bf16.mxu0 %v4273_v25  ;;  %4797 = vst [vmem:[#allocation92_spill] sm:$0xff] %v4296_v17  ;;  %4798 = vst [vmem:[#allocation93_spill] sm:$0xff] %v4299_v47  ;;  %v682_v25 = vadd.f32 %v681_v24, %v680_v57  ;;  %v4306_v26 = vpack.c.bf16 %v1018_v22, %v1017_v60  ;;  %v648_v57 = vrot.slane %v647_v41, 1  ;;  %v1019_v52 = vld [vmem:[#allocation8 + $0x600] sm:$0xff]  ;;  %v1037_v12 = vld [vmem:[#allocation8 + $0x690] sm:$0xff] }
 0x172   :  { %4799 = vst [vmem:[#allocation94_spill] sm:$0xff] %v4302_v4  ;;  %v1038_v35 = vld [vmem:[#allocation8 + $0x698] sm:$0xff]  ;;  %v4314_v60 = vpack.c.bf16 %v1002_v43, %v1001_v11  ;;  %v662_v22 = vrot.slane %v661_v15, 1  ;;  %v1021_v43 = vld [vmem:[#allocation8 + $0x610] sm:$0xff] }
 0x173   :  { %3153 = vmatpush3.bf16.msra.mxu1 %v4277_v45  ;;  %v970_v45 = vld [vmem:[#allocation8 + $0x478] sm:$0xff]  ;;  %4800 = vst [vmem:[#allocation95_spill] sm:$0xff] %v4306_v26  ;;  %v683_v9 = vrot.slane %v682_v25, 1 }
 0x174   :  { %3155 = vmatprep.subr.bf16.mxu1 %v4282_v44  ;;  %3125 = vmatpush3.bf16.msra.mxu0 %v4284_v31  ;;  %v1036_v44 = vld [vmem:[#allocation8 + $0x688] sm:$0xff]  ;;  %v4308_v58 = vpack.c.bf16 %v970_v45, %v969_v36  ;;  %v697_v45 = vrot.slane %v696_v18, 1  ;;  %v4318_v36 = vpack.c.bf16 %v1068_v0, %v1067_v27  ;;  %v1070_v11 = vld [vmem:[#allocation8 + $0x798] sm:$0xff] }
 0x175   :  { %3127 = vmatprep.subr.bf16.mxu0 %v4287_v2  ;;  %v4311_v24 = vpack.c.bf16 %v1036_v44, %v1035_v8  ;;  %v4320_v8 = vpack.c.bf16 %v1020_v7, %v1019_v52  ;;  %v1051_v44 = vld [vmem:[#allocation8 + $0x700] sm:$0xff]  ;;  %v684_v2 = vadd.f32 %v683_v9, %v682_v25  ;;  %v1040_v31 = vld [vmem:[#allocation8 + $0x6a8] sm:$0xff]  ;;  %v663_v52 = vadd.f32 %v662_v22, %v661_v15  ;;  %v1053_v7 = vld [vmem:[#allocation8 + $0x710] sm:$0xff] }
 0x176   :  { %v698_v0 = vadd.f32 %v697_v45, %v696_v18  ;;  %v1071_v25 = vld [vmem:[#allocation8 + $0x7a0] sm:$0xff]  ;;  %v1041_v18 = vld [vmem:[#allocation8 + $0x6b0] sm:$0xff]  ;;  %v1042_v15 = vld [vmem:[#allocation8 + $0x6b8] sm:$0xff] }
 0x177   :  { %3157 = vmatpush3.bf16.msra.mxu1 %v4290_v30  ;;  %v4323_v30 = vpack.c.bf16 %v1038_v35, %v1037_v12  ;;  %v1054_v12 = vld [vmem:[#allocation8 + $0x718] sm:$0xff]  ;;  %v1024_v35 = vld [vmem:[#allocation8 + $0x628] sm:$0xff]  ;;  %v1073_v22 = vld [vmem:[#allocation8 + $0x7b0] sm:$0xff] }
 0x178   :  { %3159 = vmatprep.subr.bf16.mxu1 %v4294_v5  ;;  %3129 = vmatpush3.bf16.msra.mxu0 %v4296_v17  ;;  %v1069_v17 = vld [vmem:[#allocation8 + $0x790] sm:$0xff]  ;;  %v649_v5 = vadd.f32 %v648_v57, %v647_v41  ;;  %v1056_v45 = vld [vmem:[#allocation8 + $0x728] sm:$0xff] }
 0x179   :  { %3131 = vmatprep.subr.bf16.mxu0 %v4299_v47  ;;  %v1052_v47 = vld [vmem:[#allocation8 + $0x708] sm:$0xff]  ;;  %v4330_v41 = vpack.c.bf16 %v1070_v11, %v1069_v17  ;;  %v4338_v17 = vpack.c.bf16 %v1054_v12, %v1053_v7  ;;  %v1025_v11 = vld [vmem:[#allocation8 + $0x630] sm:$0xff] }
 0x17a   :  { %v4326_v27 = vpack.c.bf16 %v1052_v47, %v1051_v44  ;;  %v1023_v47 = vld [vmem:[#allocation8 + $0x620] sm:$0xff]  ;;  %v1074_v44 = vld [vmem:[#allocation8 + $0x7b8] sm:$0xff] }
 0x17b   :  { %3161 = vmatpush3.bf16.msra.mxu1 %v4302_v4  ;;  %v1022_v4 = vld [vmem:[#allocation8 + $0x618] sm:$0xff]  ;;  %4802 = vst [vmem:[#allocation97_spill] sm:$0xff] %v4330_v41  ;;  %4805 = vst [vmem:[#allocation100_spill] sm:$0xff] %v4338_v17  ;;  %v4354_v12 = vpack.c.bf16 %v1074_v44, %v1073_v22  ;;  %v686_v44 = vrot.slane %v4126_v51, 4 }
 0x17c   :  { %3163 = vmatprep.subr.bf16.mxu1 %v4306_v26  ;;  %3133 = vmatpush3.bf16.msra.mxu0 %v4308_v58  ;;  %v1039_v26 = vld [vmem:[#allocation8 + $0x6a0] sm:$0xff]  ;;  %4801 = vst [vmem:[#allocation96_spill] sm:$0xff] %v4326_v27  ;;  %v4332_v57 = vpack.c.bf16 %v1022_v4, %v1021_v43  ;;  %v1026_v43 = vld [vmem:[#allocation8 + $0x638] sm:$0xff] }
 0x17d   :  { %3167 = vmatprep.subr.bf16.mxu0 %v4311_v24  ;;  %v4335_v9 = vpack.c.bf16 %v1040_v31, %v1039_v26  ;;  %v4344_v31 = vpack.c.bf16 %v1024_v35, %v1023_v47  ;;  %v1055_v26 = vld [vmem:[#allocation8 + $0x720] sm:$0xff]  ;;  %4810 = vst [vmem:[#allocation105_spill] sm:$0xff] %v4354_v12  ;;  %v1058_v47 = vld [vmem:[#allocation8 + $0x738] sm:$0xff] }
 0x17e   :  { %4803 = vst [vmem:[#allocation98_spill] sm:$0xff] %v4332_v57  ;;  %v4350_v7 = vpack.c.bf16 %v1056_v45, %v1055_v26  ;;  %v1075_v35 = vld [vmem:[#allocation8 + $0x7c0] sm:$0xff]  ;;  %v1028_v45 = vld [vmem:[#allocation8 + $0x648] sm:$0xff] }
 0x17f   :  { %3165 = vmatpush3.bf16.msra.mxu1 %v4314_v60  ;;  %1428 = vmatmul.mubr.f32.vlgmr.msra.gmra.mrb[20].mxu0 %v649_v5  ;;  %4804 = vst [vmem:[#allocation99_spill] sm:$0xff] %v4335_v9  ;;  %v1072_v5 = vld [vmem:[#allocation8 + $0x7a8] sm:$0xff]  ;;  %4807 = vst [vmem:[#allocation102_spill] sm:$0xff] %v4344_v31  ;;  %v1027_v26 = vld [vmem:[#allocation8 + $0x640] sm:$0xff] }
 0x180   :  { %3199 = vmatprep.subr.bf16.mxu1 %v4318_v36  ;;  %3169 = vmatpush3.bf16.msra.mxu0 %v4320_v8  ;;  %v4342_v4 = vpack.c.bf16 %v1072_v5, %v1071_v25  ;;  %4809 = vst [vmem:[#allocation104_spill] sm:$0xff] %v4350_v7  ;;  %v4356_v25 = vpack.c.bf16 %v1026_v43, %v1025_v11  ;;  %v1057_v5 = vld [vmem:[#allocation8 + $0x730] sm:$0xff] }
 0x181   :  { %3171 = vmatprep.subr.bf16.mxu0 %v4323_v30  ;;  %1567 = vmatprep.mubr.f32.mxu0 %v684_v2  ;;  %v4347_v2 = vpack.c.bf16 %v1042_v15, %v1041_v18  ;;  %v672_v18 = vrot.slane %v4101_v16, 4  ;;  %v4364_v22 = vpack.c.bf16 %v1058_v47, %v1057_v5  ;;  %v4371_v43 = vpack.c.bf16 %v1028_v45, %v1027_v26  ;;  %v1078_v47 = vld [vmem:[#allocation8 + $0x7d8] sm:$0xff]  ;;  %v1079_v45 = vld [vmem:[#allocation8 + $0x7e0] sm:$0xff] }
 0x182   :  { %1498 = vmatmul.mubr.f32.vlgmr.msra.gmra.mrb[20].mxu1 %v663_v52  ;;  %4806 = vst [vmem:[#allocation101_spill] sm:$0xff] %v4342_v4  ;;  %v1043_v52 = vld [vmem:[#allocation8 + $0x6c0] sm:$0xff]  ;;  %4811 = vst [vmem:[#allocation106_spill] sm:$0xff] %v4356_v25  ;;  %v687_v26 = vadd.f32 %v686_v44, %v4126_v51  ;;  %v1049_v44 = vld [vmem:[#allocation8 + $0x6f0] sm:$0xff] }
 0x183   :  { %3201 = vmatpush3.bf16.msra.mxu1 %v4326_v27  ;;  %1637 = vmatprep.mubr.f32.mxu1 %v698_v0  ;;  %4808 = vst [vmem:[#allocation103_spill] sm:$0xff] %v4347_v2  ;;  %v1044_v0 = vld [vmem:[#allocation8 + $0x6c8] sm:$0xff]  ;;  %4813 = vst [vmem:[#allocation108_spill] sm:$0xff] %v4364_v22  ;;  %v1047_v27 = vld [vmem:[#allocation8 + $0x6e0] sm:$0xff] }
 0x184   :  { %3203 = vmatprep.subr.bf16.mxu1 %v4330_v41  ;;  %3173 = vmatpush3.bf16.msra.mxu0 %v4332_v57  ;;  %v4360_v15 = vpack.c.bf16 %v1044_v0, %v1043_v52  ;;  %4815 = vst [vmem:[#allocation110_spill] sm:$0xff] %v4371_v43  ;;  %v1059_v52 = vld [vmem:[#allocation8 + $0x740] sm:$0xff]  ;;  %v1060_v0 = vld [vmem:[#allocation8 + $0x748] sm:$0xff]  ;;  %v737_v57 = vrot.slane %v3937_v37, 4  ;;  %v673_v41 = vadd.f32 %v672_v18, %v4101_v16  ;;  %v1062_v18 = vld [vmem:[#allocation8 + $0x758] sm:$0xff] }
 0x185   :  { %3175 = vmatprep.subr.bf16.mxu0 %v4335_v9  ;;  %v1045_v9 = vld [vmem:[#allocation8 + $0x6d0] sm:$0xff] }
 0x186   :  { %4812 = vst [vmem:[#allocation107_spill] sm:$0xff] %v4360_v15  ;;  %v738_v51 = vadd.f32 %v737_v57, %v3937_v37 }
 0x187   :  { %3205 = vmatpush3.bf16.msra.mxu1 %v4338_v17  ;;  %v1076_v17 = vld [vmem:[#allocation8 + $0x7c8] sm:$0xff] }
 0x188   :  { %3207 = vmatprep.subr.bf16.mxu1 %v4342_v4  ;;  %3177 = vmatpush3.bf16.msra.mxu0 %v4344_v31  ;;  %v1046_v4 = vld [vmem:[#allocation8 + $0x6d8] sm:$0xff]  ;;  %v723_v31 = vrot.slane %v3923_v6, 4  ;;  %v4369_v11 = vpack.c.bf16 %v1076_v17, %v1075_v35  ;;  %v4379_v17 = vpack.c.bf16 %v1060_v0, %v1059_v52  ;;  %v1080_v0 = vld [vmem:[#allocation8 + $0x7e8] sm:$0xff] }
 0x189   :  { %3179 = vmatprep.subr.bf16.mxu0 %v4347_v2  ;;  %v1077_v2 = vld [vmem:[#allocation8 + $0x7d0] sm:$0xff]  ;;  %v4376_v5 = vpack.c.bf16 %v1046_v4, %v1045_v9 }
 0x18a   :  { %4814 = vst [vmem:[#allocation109_spill] sm:$0xff] %v4369_v11  ;;  %4817 = vst [vmem:[#allocation112_spill] sm:$0xff] %v4379_v17  ;;  %v724_v35 = vadd.f32 %v723_v31, %v3923_v6  ;;  %v4385_v16 = vpack.c.bf16 %v1078_v47, %v1077_v2  ;;  %v1061_v4 = vld [vmem:[#allocation8 + $0x750] sm:$0xff]  ;;  %v1031_v6 = vld [vmem:[#allocation8 + $0x660] sm:$0xff]  ;;  %v4398_v47 = vpack.c.bf16 %v1080_v0, %v1079_v45 }
 0x18b   :  { %3209 = vmatpush3.bf16.msra.mxu1 %v4350_v7  ;;  %4816 = vst [vmem:[#allocation111_spill] sm:$0xff] %v4376_v5  ;;  %v1029_v7 = vld [vmem:[#allocation8 + $0x650] sm:$0xff]  ;;  %v1032_v31 = vld [vmem:[#allocation8 + $0x668] sm:$0xff]  ;;  %v4394_v2 = vpack.c.bf16 %v1062_v18, %v1061_v4  ;;  %v1082_v4 = vld [vmem:[#allocation8 + $0x7f8] sm:$0xff] }
 0x18c   :  { %3211 = vmatprep.subr.bf16.mxu1 %v4354_v12  ;;  %3181 = vmatpush3.bf16.msra.mxu0 %v4356_v25  ;;  %v1030_v12 = vld [vmem:[#allocation8 + $0x658] sm:$0xff]  ;;  %v1048_v25 = vld [vmem:[#allocation8 + $0x6e8] sm:$0xff]  ;;  %4818 = vst [vmem:[#allocation113_spill] sm:$0xff] %v4385_v16  ;;  %v1033_v18 = vld [vmem:[#allocation8 + $0x670] sm:$0xff] }
 0x18d   :  { %3183 = vmatprep.subr.bf16.mxu0 %v4360_v15  ;;  %v4387_v9 = vpack.c.bf16 %v1030_v12, %v1029_v7  ;;  %v674_v15 = vrot.slane %v673_v41, 2  ;;  %v4390_v52 = vpack.c.bf16 %v1048_v25, %v1047_v27  ;;  %v725_v7 = vrot.slane %v724_v35, 2  ;;  %v1063_v25 = vld [vmem:[#allocation8 + $0x760] sm:$0xff] }
 0x18e   :  { %v688_v12 = vrot.slane %v687_v26, 2  ;;  %v4400_v27 = vpack.c.bf16 %v1032_v31, %v1031_v6 }
 0x18f   :  { %3213 = vmatpush3.bf16.msra.mxu1 %v4364_v22  ;;  %v675_v37 = vadd.f32 %v674_v15, %v673_v41  ;;  %v739_v22 = vrot.slane %v738_v51, 2  ;;  %v726_v45 = vadd.f32 %v725_v7, %v724_v35  ;;  %v1065_v15 = vld [vmem:[#allocation8 + $0x770] sm:$0xff] }
 0x190   :  { %3215 = vmatprep.subr.bf16.mxu1 %v4369_v11  ;;  %3185 = vmatpush3.bf16.msra.mxu0 %v4371_v43  ;;  %v1050_v11 = vld [vmem:[#allocation8 + $0x6f8] sm:$0xff]  ;;  %v1081_v43 = vld [vmem:[#allocation8 + $0x7f0] sm:$0xff]  ;;  %v689_v0 = vadd.f32 %v688_v12, %v687_v26 }
 0x191   :  { %3187 = vmatprep.subr.bf16.mxu0 %v4376_v5  ;;  %v1064_v5 = vld [vmem:[#allocation8 + $0x768] sm:$0xff]  ;;  %v4403_v57 = vpack.c.bf16 %v1050_v11, %v1049_v44  ;;  %v4410_v6 = vpack.c.bf16 %v1082_v4, %v1081_v43  ;;  %v1066_v11 = vld [vmem:[#allocation8 + $0x778] sm:$0xff]  ;;  %v676_v31 = vrot.slane %v675_v37, 1  ;;  %v740_v44 = vadd.f32 %v739_v22, %v738_v51 }
 0x192   :  { %v727_v35 = vrot.slane %v726_v45, 1  ;;  %v690_v26 = vrot.slane %v689_v0, 1  ;;  %v4825_v4 = vld [vmem:[#allocation44_spill] sm:$0xff] }
 0x193   :  { %3217 = vmatpush3.bf16.msra.mxu1 %v4379_v17  ;;  %v1034_v17 = vld [vmem:[#allocation8 + $0x678] sm:$0xff]  ;;  %v677_v43 = vadd.f32 %v676_v31, %v675_v37 }
 0x194   :  { %3219 = vmatprep.subr.bf16.mxu1 %v4385_v16  ;;  %3189 = vmatpush3.bf16.msra.mxu0 %v4387_v9  ;;  %v4406_v16 = vpack.c.bf16 %v1064_v5, %v1063_v25  ;;  %v4412_v41 = vpack.c.bf16 %v1034_v17, %v1033_v18  ;;  %v4416_v5 = vpack.c.bf16 %v1066_v11, %v1065_v15  ;;  %v741_v17 = vrot.slane %v740_v44, 1  ;;  %v4822_v25 = vld [vmem:[#allocation21_spill] sm:$0xff]  ;;  %v4826_v18 = vld [vmem:[#allocation22_spill] sm:$0xff]  ;;  %v4830_v15 = vld [vmem:[#allocation24_spill] sm:$0xff] }
 0x195   :  { %3191 = vmatprep.subr.bf16.mxu0 %v4390_v52  ;;  %v728_v7 = vadd.f32 %v727_v35, %v726_v45  ;;  %v691_v12 = vadd.f32 %v690_v26, %v689_v0  ;;  %v4829_v0 = vld [vmem:[#allocation25_spill] sm:$0xff]  ;;  %v4832_v35 = vld [vmem:[#allocation27_spill] sm:$0xff] }
 0x196   :  { %v742_v22 = vadd.f32 %v741_v17, %v740_v44  ;;  %v4831_v44 = vld [vmem:[#allocation26_spill] sm:$0xff] }
 0x197   :  { %3221 = vmatpush3.bf16.msra.mxu1 %v4394_v2 }
 0x198   :  { %3223 = vmatprep.subr.bf16.mxu1 %v4398_v47  ;;  %3193 = vmatpush3.bf16.msra.mxu0 %v4400_v27 }
 0x199   :  { %3195 = vmatprep.subr.bf16.mxu0 %v4403_v57 }
 0x19b   :  { %3225 = vmatpush3.bf16.msra.mxu1 %v4406_v16 }
 0x19c   :  { %3227 = vmatprep.subr.bf16.mxu1 %v4410_v6  ;;  %3197 = vmatpush3.bf16.msra.mxu0 %v4412_v41 }
 0x19d   :  { %3231 = vmatprep.subr.bf16.mxu0 %v3781_v39  ;;  %v4819_v39 = vld [vmem:[#allocation18_spill] sm:$0xff] }
 0x19f   :  { %3229 = vmatpush3.bf16.msra.mxu1 %v4416_v5  ;;  %1568 = vmatmul.mubr.f32.vlgmr.msra.gmra.mrb[22].mxu0 %v677_v43  ;;  %v4833_v43 = vld [vmem:[#allocation29_spill] sm:$0xff] }
 0x1a0   :  { %3263 = vmatprep.subr.bf16.mxu1 %v3783_v40  ;;  %3233 = vmatpush3.bf16.msra.mxu0 %v3793_v49  ;;  %v4820_v40 = vld [vmem:[#allocation19_spill] sm:$0xff] }
 0x1a1   :  { %1707 = vmatprep.mubr.f32.mxu0 %v728_v7  ;;  %3235 = vmatprep.subr.bf16.mxu0 %v3797_v53  ;;  %v4821_v49 = vld [vmem:[#allocation43_spill] sm:$0xff]  ;;  %v4834_v7 = vld [vmem:[#allocation28_spill] sm:$0xff] }
 0x1a2   :  { %1638 = vmatmul.mubr.f32.vlgmr.msra.gmra.mrb[22].mxu1 %v691_v12  ;;  %v716_v51 = vrot.slane %v4821_v49, 4  ;;  %v4823_v53 = vld [vmem:[#allocation47_spill] sm:$0xff] }
 0x1a3   :  { %3265 = vmatpush3.bf16.msra.mxu1 %v3795_v50  ;;  %1777 = vmatprep.mubr.f32.mxu1 %v742_v22  ;;  %v751_v37 = vrot.slane %v4823_v53, 4  ;;  %v4824_v50 = vld [vmem:[#allocation20_spill] sm:$0xff] }
 0x1a4   :  { %3267 = vmatprep.subr.bf16.mxu1 %v3799_v54  ;;  %3237 = vmatpush3.bf16.msra.mxu0 %v3807_v61  ;;  %v730_v54 = vrot.slane %v4825_v4, 4  ;;  %v4827_v61 = vld [vmem:[#allocation23_spill] sm:$0xff] }
 0x1a5   :  { %3239 = vmatprep.subr.bf16.mxu0 %v3813_v1  ;;  %v4828_v1 = vld [vmem:[#allocation48_spill] sm:$0xff]  ;;  %v752_v11 = vadd.f32 %v751_v37, %v4823_v53 }
 0x1a6   :  { %v765_v45 = vrot.slane %v4828_v1, 4  ;;  %v731_v31 = vadd.f32 %v730_v54, %v4825_v4  ;;  %v4838_v53 = vld [vmem:[#allocation32_spill] sm:$0xff]  ;;  %v4840_v4 = vld [vmem:[#allocation35_spill] sm:$0xff] }
 0x1a7   :  { %3269 = vmatpush3.bf16.msra.mxu1 %v3809_v62  ;;  %v717_v62 = vadd.f32 %v716_v51, %v4821_v49  ;;  %v753_v12 = vrot.slane %v752_v11, 2  ;;  %v4837_v49 = vld [vmem:[#allocation33_spill] sm:$0xff] }
 0x1a8   :  { %3271 = vmatprep.subr.bf16.mxu1 %v4819_v39  ;;  %3241 = vmatpush3.bf16.msra.mxu0 %v4820_v40  ;;  %v766_v17 = vadd.f32 %v765_v45, %v4828_v1  ;;  %v732_v22 = vrot.slane %v731_v31, 2  ;;  %v4835_v39 = vld [vmem:[#allocation30_spill] sm:$0xff]  ;;  %v4836_v40 = vld [vmem:[#allocation31_spill] sm:$0xff]  ;;  %v4842_v45 = vld [vmem:[#allocation36_spill] sm:$0xff] }
 0x1a9   :  { %3243 = vmatprep.subr.bf16.mxu0 %v4822_v25  ;;  %v718_v26 = vrot.slane %v717_v62, 2  ;;  %v754_v37 = vadd.f32 %v753_v12, %v752_v11  ;;  %v4847_v12 = vld [vmem:[#allocation42_spill] sm:$0xff] }
 0x1aa   :  { %v767_v25 = vrot.slane %v766_v17, 2  ;;  %v733_v54 = vadd.f32 %v732_v22, %v731_v31  ;;  %v4848_v22 = vld [vmem:[#allocation50_spill] sm:$0xff] }
 0x1ab   :  { %3273 = vmatpush3.bf16.msra.mxu1 %v4824_v50  ;;  %v719_v51 = vadd.f32 %v718_v26, %v717_v62  ;;  %v4839_v50 = vld [vmem:[#allocation34_spill] sm:$0xff]  ;;  %v4845_v26 = vld [vmem:[#allocation41_spill] sm:$0xff] }
 0x1ac   :  { %3275 = vmatprep.subr.bf16.mxu1 %v4826_v18  ;;  %3245 = vmatpush3.bf16.msra.mxu0 %v4827_v61  ;;  %v4841_v18 = vld [vmem:[#allocation37_spill] sm:$0xff]  ;;  %v768_v1 = vadd.f32 %v767_v25, %v766_v17  ;;  %v734_v62 = vrot.slane %v733_v54, 1  ;;  %v4854_v25 = vld [vmem:[#allocation54_spill] sm:$0xff] }
 0x1ad   :  { %3247 = vmatprep.subr.bf16.mxu0 %v4829_v0  ;;  %v720_v61 = vrot.slane %v719_v51, 1  ;;  %v755_v0 = vrot.slane %v754_v37, 1 }
 0x1ae   :  { %v769_v11 = vrot.slane %v768_v1, 1 }
 0x1af   :  { %3277 = vmatpush3.bf16.msra.mxu1 %v4830_v15  ;;  %v4843_v15 = vld [vmem:[#allocation38_spill] sm:$0xff]  ;;  %v756_v31 = vadd.f32 %v755_v0, %v754_v37  ;;  %v4858_v37 = vld [vmem:[#allocation57_spill] sm:$0xff] }
 0x1b0   :  { %3279 = vmatprep.subr.bf16.mxu1 %v4831_v44  ;;  %3249 = vmatpush3.bf16.msra.mxu0 %v4832_v35  ;;  %v4844_v44 = vld [vmem:[#allocation39_spill] sm:$0xff]  ;;  %v721_v35 = vadd.f32 %v720_v61, %v719_v51  ;;  %v770_v17 = vadd.f32 %v769_v11, %v768_v1  ;;  %v4853_v51 = vld [vmem:[#allocation46_spill] sm:$0xff]  ;;  %v4862_v0 = vld [vmem:[#allocation65_spill] sm:$0xff] }
 0x1b1   :  { %3251 = vmatprep.subr.bf16.mxu0 %v4833_v43  ;;  %v4846_v43 = vld [vmem:[#allocation40_spill] sm:$0xff]  ;;  %v4861_v1 = vld [vmem:[#allocation62_spill] sm:$0xff] }
 0x1b3   :  { %3281 = vmatpush3.bf16.msra.mxu1 %v4834_v7  ;;  %v735_v7 = vadd.f32 %v734_v62, %v733_v54  ;;  %v4859_v54 = vld [vmem:[#allocation59_spill] sm:$0xff]  ;;  %v4863_v62 = vld [vmem:[#allocation66_spill] sm:$0xff] }
 0x1b4   :  { %3283 = vmatprep.subr.bf16.mxu1 %v4835_v39  ;;  %3253 = vmatpush3.bf16.msra.mxu0 %v4836_v40  ;;  %v4850_v40 = vld [vmem:[#allocation53_spill] sm:$0xff] }
 0x1b5   :  { %3255 = vmatprep.subr.bf16.mxu0 %v4837_v49 }
 0x1b7   :  { %3285 = vmatpush3.bf16.msra.mxu1 %v4838_v53  ;;  %v4857_v53 = vld [vmem:[#allocation58_spill] sm:$0xff] }
 0x1b8   :  { %3287 = vmatprep.subr.bf16.mxu1 %v4839_v50  ;;  %3257 = vmatpush3.bf16.msra.mxu0 %v4840_v4 }
 0x1b9   :  { %3259 = vmatprep.subr.bf16.mxu0 %v4841_v18  ;;  %v4860_v18 = vld [vmem:[#allocation61_spill] sm:$0xff] }
 0x1bb   :  { %3289 = vmatpush3.bf16.msra.mxu1 %v4842_v45 }
 0x1bc   :  { %3291 = vmatprep.subr.bf16.mxu1 %v4843_v15  ;;  %3261 = vmatpush3.bf16.msra.mxu0 %v4844_v44 }
 0x1bd   :  { %3295 = vmatprep.subr.bf16.mxu0 %v4845_v26  ;;  %v4865_v26 = vld [vmem:[#allocation69_spill] sm:$0xff] }
 0x1bf   :  { %3293 = vmatpush3.bf16.msra.mxu1 %v4846_v43  ;;  %1708 = vmatmul.mubr.f32.vlgmr.msra.gmra.mrb[24].mxu0 %v721_v35  ;;  %v4864_v35 = vld [vmem:[#allocation68_spill] sm:$0xff] }
 0x1c0   :  { %3327 = vmatprep.subr.bf16.mxu1 %v4847_v12  ;;  %3297 = vmatpush3.bf16.msra.mxu0 %v3971_v55  ;;  %v4849_v55 = vld [vmem:[#allocation45_spill] sm:$0xff]  ;;  %v4867_v12 = vld [vmem:[#allocation72_spill] sm:$0xff] }
 0x1c1   :  { %1847 = vmatprep.mubr.f32.mxu0 %v756_v31  ;;  %3299 = vmatprep.subr.bf16.mxu0 %v3982_v42  ;;  %v744_v39 = vrot.slane %v4849_v55, 4  ;;  %v4851_v42 = vld [vmem:[#allocation51_spill] sm:$0xff]  ;;  %v4866_v31 = vld [vmem:[#allocation70_spill] sm:$0xff] }
 0x1c2   :  { %1778 = vmatmul.mubr.f32.vlgmr.msra.gmra.mrb[24].mxu1 %v735_v7  ;;  %v779_v49 = vrot.slane %v4851_v42, 4 }
 0x1c3   :  { %3329 = vmatpush3.bf16.msra.mxu1 %v3973_v20  ;;  %1917 = vmatprep.mubr.f32.mxu1 %v770_v17  ;;  %v4852_v20 = vld [vmem:[#allocation52_spill] sm:$0xff]  ;;  %v4868_v17 = vld [vmem:[#allocation73_spill] sm:$0xff] }
 0x1c4   :  { %3331 = vmatprep.subr.bf16.mxu1 %v4001_v14  ;;  %3301 = vmatpush3.bf16.msra.mxu0 %v4007_v46  ;;  %v758_v14 = vrot.slane %v4853_v51, 4  ;;  %v4855_v46 = vld [vmem:[#allocation56_spill] sm:$0xff]  ;;  %v780_v50 = vadd.f32 %v779_v49, %v4851_v42  ;;  %v4870_v42 = vld [vmem:[#allocation75_spill] sm:$0xff] }
 0x1c5   :  { %3303 = vmatprep.subr.bf16.mxu0 %v4022_v28  ;;  %v4856_v28 = vld [vmem:[#allocation60_spill] sm:$0xff] }
 0x1c6   :  { %v759_v4 = vadd.f32 %v758_v14, %v4853_v51  ;;  %v781_v15 = vrot.slane %v780_v50, 2 }
 0x1c7   :  { %3333 = vmatpush3.bf16.msra.mxu1 %v4020_v34  ;;  %v745_v34 = vadd.f32 %v744_v39, %v4849_v55  ;;  %v4869_v55 = vld [vmem:[#allocation74_spill] sm:$0xff] }
 0x1c8   :  { %3335 = vmatprep.subr.bf16.mxu1 %v4040_v23  ;;  %3305 = vmatpush3.bf16.msra.mxu0 %v4848_v22  ;;  %v793_v23 = vrot.slane %v4856_v28, 4  ;;  %v760_v44 = vrot.slane %v759_v4, 2  ;;  %v782_v7 = vadd.f32 %v781_v15, %v780_v50  ;;  %v4879_v50 = vld [vmem:[#allocation83_spill] sm:$0xff] }
 0x1c9   :  { %3307 = vmatprep.subr.bf16.mxu0 %v4850_v40  ;;  %v746_v61 = vrot.slane %v745_v34, 2 }
 0x1ca   :  { %v794_v45 = vadd.f32 %v793_v23, %v4856_v28  ;;  %v761_v22 = vadd.f32 %v760_v44, %v759_v4  ;;  %v783_v49 = vrot.slane %v782_v7, 1  ;;  %v4875_v23 = vld [vmem:[#allocation80_spill] sm:$0xff]  ;;  %v4885_v44 = vld [vmem:[#allocation86_spill] sm:$0xff] }
 0x1cb   :  { %3337 = vmatpush3.bf16.msra.mxu1 %v4852_v20  ;;  %v747_v11 = vadd.f32 %v746_v61, %v745_v34  ;;  %v4871_v20 = vld [vmem:[#allocation76_spill] sm:$0xff]  ;;  %v4882_v61 = vld [vmem:[#allocation71_spill] sm:$0xff] }
 0x1cc   :  { %3339 = vmatprep.subr.bf16.mxu1 %v4854_v25  ;;  %3309 = vmatpush3.bf16.msra.mxu0 %v4855_v46  ;;  %v795_v43 = vrot.slane %v794_v45, 2  ;;  %v762_v51 = vrot.slane %v761_v22, 1  ;;  %v784_v46 = vadd.f32 %v783_v49, %v782_v7  ;;  %v4890_v7 = vld [vmem:[#allocation91_spill] sm:$0xff] }
 0x1cd   :  { %3311 = vmatprep.subr.bf16.mxu0 %v4857_v53  ;;  %v748_v39 = vrot.slane %v747_v11, 1  ;;  %v4876_v53 = vld [vmem:[#allocation81_spill] sm:$0xff]  ;;  %v4894_v49 = vld [vmem:[#allocation95_spill] sm:$0xff] }
 0x1ce   :  { %v796_v40 = vadd.f32 %v795_v43, %v794_v45  ;;  %v763_v34 = vadd.f32 %v762_v51, %v761_v22  ;;  %v4892_v22 = vld [vmem:[#allocation93_spill] sm:$0xff] }
 0x1cf   :  { %3341 = vmatpush3.bf16.msra.mxu1 %v4858_v37  ;;  %v749_v14 = vadd.f32 %v748_v39, %v747_v11 }
 0x1d0   :  { %3343 = vmatprep.subr.bf16.mxu1 %v4859_v54  ;;  %3313 = vmatpush3.bf16.msra.mxu0 %v4860_v18  ;;  %v797_v25 = vrot.slane %v796_v40, 1 }
 0x1d1   :  { %3315 = vmatprep.subr.bf16.mxu0 %v4861_v1  ;;  %v821_v1 = vrot.slane %v4882_v61, 4 }
 0x1d2   :  { %v798_v28 = vadd.f32 %v797_v25, %v796_v40  ;;  %v4893_v40 = vld [vmem:[#allocation94_spill] sm:$0xff] }
 0x1d3   :  { %3345 = vmatpush3.bf16.msra.mxu1 %v4862_v0 }
 0x1d4   :  { %3347 = vmatprep.subr.bf16.mxu1 %v4863_v62  ;;  %3317 = vmatpush3.bf16.msra.mxu0 %v4864_v35 }
 0x1d5   :  { %3319 = vmatprep.subr.bf16.mxu0 %v4865_v26  ;;  %v4888_v26 = vld [vmem:[#allocation89_spill] sm:$0xff] }
 0x1d7   :  { %3349 = vmatpush3.bf16.msra.mxu1 %v4866_v31 }
 0x1d8   :  { %3351 = vmatprep.subr.bf16.mxu1 %v4867_v12  ;;  %3321 = vmatpush3.bf16.msra.mxu0 %v4868_v17  ;;  %v4891_v12 = vld [vmem:[#allocation92_spill] sm:$0xff] }
 0x1d9   :  { %3323 = vmatprep.subr.bf16.mxu0 %v4869_v55 }
 0x1db   :  { %3353 = vmatpush3.bf16.msra.mxu1 %v4870_v42 }
 0x1dc   :  { %3355 = vmatprep.subr.bf16.mxu1 %v4871_v20  ;;  %3325 = vmatpush3.bf16.msra.mxu0 %v4188_v32  ;;  %v4872_v32 = vld [vmem:[#allocation77_spill] sm:$0xff] }
 0x1dd   :  { %3359 = vmatprep.subr.bf16.mxu0 %v4191_v21  ;;  %v4873_v21 = vld [vmem:[#allocation78_spill] sm:$0xff] }
 0x1df   :  { %3357 = vmatpush3.bf16.msra.mxu1 %v4194_v59  ;;  %1848 = vmatmul.mubr.f32.vlgmr.msra.gmra.mrb[26].mxu0 %v749_v14  ;;  %v4874_v59 = vld [vmem:[#allocation79_spill] sm:$0xff] }
 0x1e0   :  { %3391 = vmatprep.subr.bf16.mxu1 %v4198_v56  ;;  %3361 = vmatpush3.bf16.msra.mxu0 %v4200_v33  ;;  %v4877_v56 = vld [vmem:[#allocation82_spill] sm:$0xff]  ;;  %v4878_v33 = vld [vmem:[#allocation49_spill] sm:$0xff] }
 0x1e1   :  { %1987 = vmatprep.mubr.f32.mxu0 %v784_v46  ;;  %3363 = vmatprep.subr.bf16.mxu0 %v4203_v10  ;;  %v772_v37 = vrot.slane %v4878_v33, 4  ;;  %v4880_v10 = vld [vmem:[#allocation67_spill] sm:$0xff] }
 0x1e2   :  { %1918 = vmatmul.mubr.f32.vlgmr.msra.gmra.mrb[26].mxu1 %v763_v34  ;;  %v807_v4 = vrot.slane %v4880_v10, 4 }
 0x1e3   :  { %3393 = vmatpush3.bf16.msra.mxu1 %v4206_v29  ;;  %2057 = vmatprep.mubr.f32.mxu1 %v798_v28  ;;  %v4881_v29 = vld [vmem:[#allocation55_spill] sm:$0xff]  ;;  %v773_v18 = vadd.f32 %v772_v37, %v4878_v33  ;;  %v4896_v28 = vld [vmem:[#allocation97_spill] sm:$0xff]  ;;  %v4907_v37 = vld [vmem:[#allocation106_spill] sm:$0xff] }
 0x1e4   :  { %3395 = vmatprep.subr.bf16.mxu1 %v4872_v32  ;;  %3365 = vmatpush3.bf16.msra.mxu0 %v4873_v21  ;;  %v786_v54 = vrot.slane %v4881_v29, 4  ;;  %v808_v45 = vadd.f32 %v807_v4, %v4880_v10  ;;  %v4899_v32 = vld [vmem:[#allocation100_spill] sm:$0xff]  ;;  %v4900_v21 = vld [vmem:[#allocation101_spill] sm:$0xff]  ;;  %v4908_v10 = vld [vmem:[#allocation107_spill] sm:$0xff] }
 0x1e5   :  { %3367 = vmatprep.subr.bf16.mxu0 %v4874_v59  ;;  %v774_v15 = vrot.slane %v773_v18, 2  ;;  %v4906_v33 = vld [vmem:[#allocation105_spill] sm:$0xff]  ;;  %v4909_v4 = vld [vmem:[#allocation108_spill] sm:$0xff] }
 0x1e6   :  { %v787_v0 = vadd.f32 %v786_v54, %v4881_v29  ;;  %v809_v62 = vrot.slane %v808_v45, 2  ;;  %v4910_v54 = vld [vmem:[#allocation109_spill] sm:$0xff] }
 0x1e7   :  { %3397 = vmatpush3.bf16.msra.mxu1 %v4875_v23  ;;  %v775_v11 = vadd.f32 %v774_v15, %v773_v18  ;;  %v4903_v23 = vld [vmem:[#allocation103_spill] sm:$0xff]  ;;  %v4911_v18 = vld [vmem:[#allocation110_spill] sm:$0xff] }
 0x1e8   :  { %3399 = vmatprep.subr.bf16.mxu1 %v4876_v53  ;;  %3369 = vmatpush3.bf16.msra.mxu0 %v4877_v56  ;;  %v788_v35 = vrot.slane %v787_v0, 2  ;;  %v810_v31 = vadd.f32 %v809_v62, %v808_v45  ;;  %v4905_v53 = vld [vmem:[#allocation64_spill] sm:$0xff] }
 0x1e9   :  { %3371 = vmatprep.subr.bf16.mxu0 %v4879_v50  ;;  %v776_v55 = vrot.slane %v775_v11, 1  ;;  %v814_v56 = vrot.slane %v4905_v53, 4 }
 0x1ea   :  { %v789_v17 = vadd.f32 %v788_v35, %v787_v0  ;;  %v811_v42 = vrot.slane %v810_v31, 1  ;;  %v4913_v0 = vld [vmem:[#allocation112_spill] sm:$0xff] }
 0x1eb   :  { %3401 = vmatpush3.bf16.msra.mxu1 %v4230_v63  ;;  %v4883_v63 = vld [vmem:[#allocation84_spill] sm:$0xff]  ;;  %v777_v51 = vadd.f32 %v776_v55, %v775_v11  ;;  %v815_v29 = vadd.f32 %v814_v56, %v4905_v53 }
 0x1ec   :  { %3403 = vmatprep.subr.bf16.mxu1 %v4234_v19  ;;  %3373 = vmatpush3.bf16.msra.mxu0 %v4236_v48  ;;  %v4884_v19 = vld [vmem:[#allocation85_spill] sm:$0xff]  ;;  %v822_v48 = vadd.f32 %v821_v1, %v4882_v61  ;;  %v790_v20 = vrot.slane %v789_v17, 1  ;;  %v812_v25 = vadd.f32 %v811_v42, %v810_v31  ;;  %v4912_v1 = vld [vmem:[#allocation111_spill] sm:$0xff] }
 0x1ed   :  { %3375 = vmatprep.subr.bf16.mxu0 %v4241_v13  ;;  %v4886_v13 = vld [vmem:[#allocation87_spill] sm:$0xff]  ;;  %v816_v15 = vrot.slane %v815_v29, 2 }
 0x1ee   :  { %v823_v43 = vrot.slane %v822_v48, 2  ;;  %v791_v46 = vadd.f32 %v790_v20, %v789_v17 }
 0x1ef   :  { %3405 = vmatpush3.bf16.msra.mxu1 %v4260_v38  ;;  %v4887_v38 = vld [vmem:[#allocation88_spill] sm:$0xff] }
 0x1f0   :  { %3407 = vmatprep.subr.bf16.mxu1 %v4263_v3  ;;  %3377 = vmatpush3.bf16.msra.mxu0 %v4883_v63  ;;  %v4889_v3 = vld [vmem:[#allocation90_spill] sm:$0xff]  ;;  %v824_v39 = vadd.f32 %v823_v43, %v822_v48 }
 0x1f1   :  { %3379 = vmatprep.subr.bf16.mxu0 %v4884_v19  ;;  %v4914_v19 = vld [vmem:[#allocation113_spill] sm:$0xff] }
 0x1f2   :  { %v825_v14 = vrot.slane %v824_v39, 1 }
 0x1f3   :  { %3409 = vmatpush3.bf16.msra.mxu1 %v4885_v44 }
 0x1f4   :  { %3411 = vmatprep.subr.bf16.mxu1 %v4886_v13  ;;  %3381 = vmatpush3.bf16.msra.mxu0 %v4887_v38  ;;  %v826_v34 = vadd.f32 %v825_v14, %v824_v39  ;;  %v817_v38 = vadd.f32 %v816_v15, %v815_v29 }
 0x1f5   :  { %3383 = vmatprep.subr.bf16.mxu0 %v4888_v26 }
 0x1f7   :  { %3413 = vmatpush3.bf16.msra.mxu1 %v4889_v3 }
 0x1f8   :  { %3415 = vmatprep.subr.bf16.mxu1 %v4890_v7  ;;  %3385 = vmatpush3.bf16.msra.mxu0 %v4891_v12 }
 0x1f9   :  { %3387 = vmatprep.subr.bf16.mxu0 %v4892_v22 }
 0x1fb   :  { %3417 = vmatpush3.bf16.msra.mxu1 %v4893_v40 }
 0x1fc   :  { %3419 = vmatprep.subr.bf16.mxu1 %v4894_v49  ;;  %3389 = vmatpush3.bf16.msra.mxu0 %v4308_v58  ;;  %v4895_v58 = vld [vmem:[#allocation96_spill] sm:$0xff] }
 0x1fd   :  { %3423 = vmatprep.subr.bf16.mxu0 %v4311_v24  ;;  %v4897_v24 = vld [vmem:[#allocation98_spill] sm:$0xff] }
 0x1ff   :  { %3421 = vmatpush3.bf16.msra.mxu1 %v4314_v60  ;;  %1988 = vmatmul.mubr.f32.vlgmr.msra.gmra.mrb[28].mxu0 %v777_v51  ;;  %v4898_v60 = vld [vmem:[#allocation99_spill] sm:$0xff] }
 0x200   :  { %3455 = vmatprep.subr.bf16.mxu1 %v4318_v36  ;;  %3425 = vmatpush3.bf16.msra.mxu0 %v4320_v8  ;;  %v4901_v36 = vld [vmem:[#allocation102_spill] sm:$0xff]  ;;  %v4902_v8 = vld [vmem:[#allocation63_spill] sm:$0xff] }
 0x201   :  { %2127 = vmatprep.mubr.f32.mxu0 %v812_v25  ;;  %3427 = vmatprep.subr.bf16.mxu0 %v4323_v30  ;;  %v800_v59 = vrot.slane %v4902_v8, 4  ;;  %v4904_v30 = vld [vmem:[#allocation104_spill] sm:$0xff] }
 0x202   :  { %2058 = vmatmul.mubr.f32.vlgmr.msra.gmra.mrb[28].mxu1 %v791_v46 }
 0x203   :  { %3457 = vmatpush3.bf16.msra.mxu1 %v4895_v58  ;;  %2197 = vmatprep.mubr.f32.mxu1 %v826_v34  ;;  %v801_v50 = vadd.f32 %v800_v59, %v4902_v8 }
 0x204   :  { %3459 = vmatprep.subr.bf16.mxu1 %v4896_v28  ;;  %3429 = vmatpush3.bf16.msra.mxu0 %v4897_v24 }
 0x205   :  { %3431 = vmatprep.subr.bf16.mxu0 %v4898_v60  ;;  %v802_v61 = vrot.slane %v801_v50, 2 }
 0x207   :  { %3461 = vmatpush3.bf16.msra.mxu1 %v4899_v32  ;;  %v803_v62 = vadd.f32 %v802_v61, %v801_v50 }
 0x208   :  { %3463 = vmatprep.subr.bf16.mxu1 %v4900_v21  ;;  %3433 = vmatpush3.bf16.msra.mxu0 %v4901_v36 }
 0x209   :  { %3435 = vmatprep.subr.bf16.mxu0 %v4903_v23  ;;  %v804_v11 = vrot.slane %v803_v62, 1 }
 0x20b   :  { %3465 = vmatpush3.bf16.msra.mxu1 %v4904_v30 }
 0x20c   :  { %3467 = vmatprep.subr.bf16.mxu1 %v4906_v33  ;;  %3437 = vmatpush3.bf16.msra.mxu0 %v4907_v37 }
 0x20d   :  { %3439 = vmatprep.subr.bf16.mxu0 %v4908_v10 }
 0x20f   :  { %3469 = vmatpush3.bf16.msra.mxu1 %v4909_v4  ;;  %v2446_v45 = vpop.f32.mrb[16].mxu0 }
 0x210   :  { %3471 = vmatprep.subr.bf16.mxu1 %v4910_v54  ;;  %3441 = vmatpush3.bf16.msra.mxu0 %v4911_v18  ;;  %v2447_v63 = vpop.f32.mrb[17].mxu0 }
 0x211   :  { %3443 = vmatprep.subr.bf16.mxu0 %v4912_v1  ;;  %v2448_v48 = vadd.f32 %v2447_v63, %v2446_v45 }
 0x213   :  { %3473 = vmatpush3.bf16.msra.mxu1 %v4913_v0 }
 0x214   :  { %3475 = vmatprep.subr.bf16.mxu1 %v4914_v19  ;;  %3445 = vmatpush3.bf16.msra.mxu0 %v4387_v9  ;;  %v818_v9 = vrot.slane %v817_v38, 1 }
 0x215   :  { %v2481_v44 = vpop.f32.mrb[16].mxu1  ;;  %3447 = vmatprep.subr.bf16.mxu0 %v4390_v52  ;;  %v805_v52 = vadd.f32 %v804_v11, %v803_v62 }
 0x216   :  { %v2482_v35 = vpop.f32.mrb[17].mxu1 }
 0x217   :  { %v2483_v13 = vadd.f32 %v2482_v35, %v2481_v44  ;;  %3477 = vmatpush3.bf16.msra.mxu1 %v4394_v2  ;;  %v819_v2 = vadd.f32 %v818_v9, %v817_v38 }
 0x218   :  { %3479 = vmatprep.subr.bf16.mxu1 %v4398_v47  ;;  %3449 = vmatpush3.bf16.msra.mxu0 %v4400_v27 }
 0x219   :  { %v1220_v26 = vadd.f32 %v2483_v13, %v2448_v48  ;;  %3451 = vmatprep.subr.bf16.mxu0 %v4403_v57 }
 0x21b   :  { %3481 = vmatpush3.bf16.msra.mxu1 %v4406_v16 }
 0x21c   :  { %3483 = vmatprep.subr.bf16.mxu1 %v4410_v6  ;;  %3453 = vmatpush3.bf16.msra.mxu0 %v4412_v41 }
 0x21f   :  { %3485 = vmatpush3.bf16.msra.mxu1 %v4416_v5  ;;  %2128 = vmatmul.mubr.f32.vlgmr.msra.gmra.mrb[30].mxu0 %v805_v52 }
 0x222   :  { %2198 = vmatmul.mubr.f32.vlgmr.msra.gmra.mrb[30].mxu1 %v819_v2 }
 0x231   :  { %v2516_v47 = vpop.f32.mrb[18].mxu0 }
 0x232   :  { %v2517_v27 = vpop.f32.mrb[19].mxu0 }
 0x233   :  { %v2518_v43 = vadd.f32 %v2517_v27, %v2516_v47 }
 0x235   :  { %v2551_v3 = vpop.f32.mrb[18].mxu1  ;;  %v1290_v31 = vadd.f32 %v2518_v43, %v1220_v26 }
 0x236   :  { %v2552_v57 = vpop.f32.mrb[19].mxu1 }
 0x237   :  { %v2553_v7 = vadd.f32 %v2552_v57, %v2551_v3 }
 0x239   :  { %v1360_v12 = vadd.f32 %v2553_v7, %v1290_v31 }
 0x252   :  { %v2586_v16 = vpop.f32.mrb[20].mxu0 }
 0x253   :  { %v2587_v17 = vpop.f32.mrb[21].mxu0 }
 0x254   :  { %v2588_v6 = vadd.f32 %v2587_v17, %v2586_v16 }
 0x255   :  { %v2621_v22 = vpop.f32.mrb[20].mxu1 }
 0x256   :  { %v1430_v41 = vadd.f32 %v2588_v6, %v1360_v12  ;;  %v2622_v55 = vpop.f32.mrb[21].mxu1 }
 0x257   :  { %v2623_v39 = vadd.f32 %v2622_v55, %v2621_v22 }
 0x259   :  { %v1500_v40 = vadd.f32 %v2623_v39, %v1430_v41 }
 0x272   :  { %v2656_v5 = vpop.f32.mrb[22].mxu0 }
 0x273   :  { %v2657_v42 = vpop.f32.mrb[23].mxu0 }
 0x274   :  { %v2658_v49 = vadd.f32 %v2657_v42, %v2656_v5 }
 0x275   :  { %v2691_v20 = vpop.f32.mrb[22].mxu1 }
 0x276   :  { %v1570_v51 = vadd.f32 %v2658_v49, %v1500_v40  ;;  %v2692_v14 = vpop.f32.mrb[23].mxu1 }
 0x277   :  { %v2693_v25 = vadd.f32 %v2692_v14, %v2691_v20 }
 0x279   :  { %v1640_v46 = vadd.f32 %v2693_v25, %v1570_v51 }
 0x27a   :  { %3611 = shalt.err (!%p3608_p8)
}
 0x27b   :  { %s3612_s18 = scalar_lea.hbm %s4605_s4, 256 }
 0x27c   :  { %p3613_p9 = scmp.ne.s32.totalorder %s4605_s4, %s3612_s18  ;;  %p3616_p10 = scmp.lt.u32.totalorder %s3612_s18, %s4605_s4 }
 0x27e   :  { %p3618_p11 = pnand %p3616_p10, %p3613_p9 }
 0x280   :  { %3621 = shalt.err (!%p3618_p11)
}
 0x281   :  { %2352 = dma.vmem_to_hbm [thread:$0]  %s2350_s1, 256, %s4605_s4, [#allocation4]   ;;  %vm2206_vm3 = vcmask 1040384  }
 0x282   :  { %s3663_s4 = smov [#allocation11]  }
 0x283   :  { %s2359_s26 = sshll.u32 %s3663_s4, 4  ;;  %s2360_s26 = int_to_ptr.vmem [resolvable:$true] %s2359_s26 }
 0x284   :  { %s3622_s27 = scalar_lea.vmem %s2360_s26, 32  ;;  %p3627_p13 = scmp.lt.s32.totalorder %s2360_s26, %s2360_s26 }
 0x285   :  { %p3623_p12 = scmp.ne.s32.totalorder %s2360_s26, %s3622_s27  ;;  %p3628_p0 = scmp.lt.s32.totalorder %s3622_s27, %s3622_s27 }
 0x287   :  { %p3629_p1 = por %p3628_p0, %p3627_p13 }
 0x289   :  { %p3630_p2 = pnand %p3629_p1, %p3623_p12 }
 0x292   :  { %v2726_v34 = vpop.f32.mrb[24].mxu0 }
 0x293   :  { %v2727_v58 = vpop.f32.mrb[25].mxu0 }
 0x294   :  { %v2728_v28 = vadd.f32 %v2727_v58, %v2726_v34 }
 0x295   :  { %v2761_v24 = vpop.f32.mrb[24].mxu1 }
 0x296   :  { %v2762_v60 = vpop.f32.mrb[25].mxu1 }
 0x297   :  { %v2763_v32 = vadd.f32 %v2762_v60, %v2761_v24 }
 0x299   :  { %v1780_v21 = vadd.f32 %v2763_v32, %v2728_v28 }
 0x2b2   :  { %v2796_v36 = vpop.f32.mrb[26].mxu0 }
 0x2b3   :  { %v2797_v8 = vpop.f32.mrb[27].mxu0 }
 0x2b4   :  { %v2798_v59 = vadd.f32 %v2797_v8, %v2796_v36 }
 0x2b5   :  { %v2831_v23 = vpop.f32.mrb[26].mxu1 }
 0x2b6   :  { %v1850_v30 = vadd.f32 %v2798_v59, %v1780_v21  ;;  %v2832_v53 = vpop.f32.mrb[27].mxu1 }
 0x2b7   :  { %v2833_v56 = vadd.f32 %v2832_v53, %v2831_v23 }
 0x2b9   :  { %v1920_v33 = vadd.f32 %v2833_v56, %v1850_v30 }
 0x2d2   :  { %v2866_v37 = vpop.f32.mrb[28].mxu0 }
 0x2d3   :  { %v2867_v50 = vpop.f32.mrb[29].mxu0 }
 0x2d4   :  { %v2868_v10 = vadd.f32 %v2867_v50, %v2866_v37 }
 0x2d5   :  { %v2901_v4 = vpop.f32.mrb[28].mxu1 }
 0x2d6   :  { %v1990_v29 = vadd.f32 %v2868_v10, %v1920_v33  ;;  %v2902_v54 = vpop.f32.mrb[29].mxu1 }
 0x2d7   :  { %v2903_v18 = vadd.f32 %v2902_v54, %v2901_v4 }
 0x2d9   :  { %v2060_v61 = vadd.f32 %v2903_v18, %v1990_v29 }
 0x2f2   :  { %v2936_v1 = vpop.f32.mrb[30].mxu0 }
 0x2f3   :  { %v2937_v45 = vpop.f32.mrb[31].mxu0 }
 0x2f4   :  { %v2938_v0 = vadd.f32 %v2937_v45, %v2936_v1 }
 0x2f5   :  { %v2971_v63 = vpop.f32.mrb[30].mxu1 }
 0x2f6   :  { %v2130_v15 = vadd.f32 %v2938_v0, %v2060_v61  ;;  %v2972_v19 = vpop.f32.mrb[31].mxu1 }
 0x2f7   :  { %v2973_v48 = vadd.f32 %v2972_v19, %v2971_v63 }
 0x2f9   :  { %v2200_v44 = vadd.f32 %v2973_v48, %v2130_v15 }
 0x2fb   :  { %v2204_v62 = vrot.slane %v2200_v44, 7 }
 0x2fd   :  { %v2207_v35 = vsel %vm2206_vm3, %v1640_v46, %v2204_v62 }
 0x2fe   :  { %2208 = vst [vmem:[#allocation11] sm:$0x3] %v2207_v35 }
 0x2ff   :  { %3633 = shalt.err (!%p3630_p2)
}
 0x300   :  { %s3634_s28 = scalar_lea.hbm %s4606_s5, 32 }
 0x301   :  { %p3635_p3 = scmp.ne.s32.totalorder %s4606_s5, %s3634_s28  ;;  %p3638_p4 = scmp.lt.u32.totalorder %s3634_s28, %s4606_s5 }
 0x303   :  { %p3640_p5 = pnand %p3638_p4, %p3635_p3 }
 0x305   :  { %3643 = shalt.err (!%p3640_p5)
}
 0x306   :  { %2362 = dma.vmem_to_hbm [thread:$0]  %s2360_s26, 32, %s4606_s5, [#allocation12]  }
 0x307   :  { %3650 = dma.done.wait [#allocation4], 256  }
 0x308   :  { %3651 = vsyncadd [#allocation4], 4294967040 }
 0x309   :  { %3652 = dma.done.wait [#allocation12], 32  }
 0x30a   :  { %3653 = vsyncadd [#allocation12], 4294967264 }
 0x30b   :  { %2369 = vsyncpa [#allocation3], 1 }
 0x30c   :  { %2370 = vsyncpa [#allocation6], 1 }
 0x30d   :  { %2371 = vsyncpa [#allocation9], 1 }
 0x30e   :  { %2372 = vsyncpa [#allocation4], 1 }
 0x30f   :  { %2373 = vsyncpa [#allocation12], 1 }

</bundles_post_ra>
